<compile_context>
chip_gen: v5e
topology: v5e:2x2
jax: 0.10.0
libtpu: 0.0.40
codegen_flags: <defaults>
</compile_context>

<pallas_src>
import math
import functools

import jax
import jax.numpy as jnp
from jax import lax
from jax.experimental import pallas as pl
from jax.experimental.pallas import tpu as pltpu

SQRT_HALF = math.sqrt(0.5)


def _round_up(x, m):
    return ((x + m - 1) // m) * m


# ----------------------------------------------------------------------------
# Pallas kernel: a stack of causal gated ResBlocks over one (batch, time) tile.
# ----------------------------------------------------------------------------
def _resstack_kernel(kernel_size, dilations, cin_p, cout_p, tile_t, halo,
                     state_ref, c_ref, wxc_ref, bfg_ref, wrs_ref, brs_ref,
                     out_ref, carry_ref):
    # state_ref: (1, TILE_T, cin_p+cskip_p) fused [residual || accumulated skip]
    # c_ref:     (1, TILE_T, ccin_p)        conditioning (time-major, mm dtype)
    # wxc_ref:   (L, K*cin_p+ccin_p, 2*cout_p) fused [im2col||cond] filter||gate
    # bfg_ref:   (L, 1, 2*cout_p)           fused filter||gate bias (conv+cond)
    # wrs_ref:   (L, cout_p, cin_p+cskip_p) fused res||skip 1x1 weights
    # brs_ref:   (L, 1, cin_p+cskip_p)      fused res||skip bias
    # out_ref:   (1, TILE_T, cin_p+cskip_p) new fused state
    # carry_ref: (L, halo, cin_p) VMEM      per-layer causal halo (prev tile)
    t = pl.program_id(1)
    mm_dtype = wxc_ref.dtype                      # bf16 or f32 matmul operands

    @pl.when(t == 0)
    def _():
        # zero left-padding of every layer's causal conv at sequence start
        carry_ref[...] = jnp.zeros_like(carry_ref)

    st = state_ref[0].astype(jnp.float32)         # (TILE_T, cin_p+cskip_p)
    x = st[:, :cin_p]                             # residual (lane-aligned split)
    skip = st[:, cin_p:]                          # accumulated skip (f32)
    c = c_ref[0].astype(mm_dtype)

    # Layer loop is unrolled in Python: static per-layer dilation -> static
    # halo slices, and all weights stay VMEM-resident across grid steps.
    for l, d in enumerate(dilations):
        xprev = carry_ref[l]                      # (halo, cin_p) previous tile
        carry_ref[l] = x[tile_t - halo:, :]       # carry for the next tile
        xwin = jnp.concatenate([xprev, x], axis=0)    # (halo+TILE_T, cin_p)

        # im2col taps: tap k reads x[t - (K-1-k)*d].
        # TODO(synk): for non-8-aligned offsets a pltpu.roll (XLU) + aligned
        # slice would avoid sublane relayouts once the body is VPU-bound.
        taps = []
        for k in range(kernel_size):
            off = (kernel_size - 1 - k) * d
            tap = x if off == 0 else xwin[halo - off: halo - off + tile_t, :]
            taps.append(tap.astype(mm_dtype))
        xcol = jnp.concatenate(taps + [c], axis=1)    # (TILE_T, K*cin_p+ccin_p)

        # Single fused filter||gate (+conditioning) MXU matmul per layer/site.
        h = (jnp.dot(xcol, wxc_ref[l], preferred_element_type=jnp.float32)
             + bfg_ref[l])
        gate = 0.5 * (jnp.tanh(0.5 * h[:, cout_p:]) + 1.0)   # sigmoid, 1 EUP op
        gated = jnp.tanh(h[:, :cout_p]) * gate

        # Fused res||skip 1x1 conv.
        y = (jnp.dot(gated.astype(mm_dtype), wrs_ref[l],
                     preferred_element_type=jnp.float32) + brs_ref[l])
        x = (x + y[:, :cin_p]) * SQRT_HALF
        skip = skip + y[:, cin_p:]                # f32 skip accumulator

    # Lane-aligned direct half-writes (no concat epilogue, unmasked stores).
    out_ref[0, :, :cin_p] = x.astype(out_ref.dtype)
    out_ref[0, :, cin_p:] = skip.astype(out_ref.dtype)


def _resstack_call(state, c, wxc, bfg, wrs, brs, *, kernel_size, dilations,
                   cin_p, cout_p, tile_t, vmem_limit_bytes):
    """Run a fused chunk of ResBlocks over the (B, T, cin_p+cskip_p) state."""
    B, T, S = state.shape
    ccin_p = c.shape[-1]
    n_layers = wxc.shape[0]
    assert len(dilations) == n_layers
    assert wxc.shape[1] == kernel_size * cin_p + ccin_p
    assert wxc.shape[2] == 2 * cout_p and wrs.shape[2] == S

    halo = max(8, _round_up(max(dilations) * (kernel_size - 1), 8))
    assert T % tile_t == 0, "tile_t must divide T"
    assert tile_t % 8 == 0, "tile_t must be sublane aligned"
    assert tile_t >= halo, "tile_t must cover the largest dilated halo"

    kernel = functools.partial(_resstack_kernel, kernel_size, tuple(dilations),
                               cin_p, cout_p, tile_t, halo)
    full = lambda a: pl.BlockSpec(a.shape, lambda b, t: (0,) * a.ndim)

    return pl.pallas_call(
        kernel,
        out_shape=jax.ShapeDtypeStruct((B, T, S), state.dtype),
        grid_spec=pltpu.PrefetchScalarGridSpec(
            num_scalar_prefetch=0,
            grid=(B, T // tile_t),
            in_specs=[
                pl.BlockSpec((1, tile_t, S), lambda b, t: (b, t, 0)),
                pl.BlockSpec((1, tile_t, ccin_p), lambda b, t: (b, t, 0)),
                # stacked per-layer weights: same block every step -> resident
                full(wxc), full(bfg), full(wrs), full(brs),
            ],
            out_specs=pl.BlockSpec((1, tile_t, S), lambda b, t: (b, t, 0)),
            scratch_shapes=[pltpu.VMEM((n_layers, halo, cin_p), jnp.float32)],
        ),
        compiler_params=pltpu.CompilerParams(
            # batch is megacore-parallel; time carries the causal halo and
            # must stay sequential.
            dimension_semantics=("parallel", "arbitrary"),
            vmem_limit_bytes=vmem_limit_bytes,
        ),
    )(state, c, wxc, bfg, wrs, brs)


# ----------------------------------------------------------------------------
# Weight fusion / padding / stacking (done ONCE per model, not per layer call).
# ----------------------------------------------------------------------------
def _block_dims(p):
    cout, cin, _ = p["wf"].shape
    ccin = p["wfc"].shape[1]
    cskip = p["ws"].shape[0]
    return dict(cin=cin, cout=cout, ccin=ccin, cskip=cskip,
                cin_p=_round_up(cin, 128), cout_p=_round_up(cout, 128),
                ccin_p=_round_up(ccin, 128), cskip_p=_round_up(cskip, 128))


def _fuse_block_params(p, kernel_size, dims):
    cin, cout, ccin, cskip = dims["cin"], dims["cout"], dims["ccin"], dims["cskip"]
    cin_p, cout_p = dims["cin_p"], dims["cout_p"]
    ccin_p, cskip_p = dims["ccin_p"], dims["cskip_p"]

    def pad2(a, rows, cols):
        return jnp.pad(a, ((0, rows - a.shape[0]), (0, cols - a.shape[1])))

    # dilated filter/gate conv weights -> tap-major im2col layout, lane padded.
    wf = jnp.transpose(p["wf"], (2, 1, 0))                      # (K, cin, cout)
    wg = jnp.transpose(p["wg"], (2, 1, 0))
    wf = jnp.pad(wf, ((0, 0), (0, cin_p - cin), (0, cout_p - cout)))
    wg = jnp.pad(wg, ((0, 0), (0, cin_p - cin), (0, cout_p - cout)))
    wfg = jnp.concatenate([wf, wg], axis=-1).reshape(kernel_size * cin_p,
                                                     2 * cout_p)
    # conditioning 1x1 weights stacked under the im2col rows (fused matmul).
    wcf = pad2(p["wfc"][:, :, 0].T, ccin_p, cout_p)
    wcg = pad2(p["wgc"][:, :, 0].T, ccin_p, cout_p)
    wxc = jnp.concatenate([wfg, jnp.concatenate([wcf, wcg], axis=-1)], axis=0)
    # fused filter||gate bias (conv bias + conditioning bias).
    bfg = jnp.concatenate([jnp.pad(p["bf"] + p["bfc"], (0, cout_p - cout)),
                           jnp.pad(p["bg"] + p["bgc"], (0, cout_p - cout))]
                          ).reshape(1, -1)
    # fused res||skip 1x1 weights / bias.
    wr = pad2(p["wr"][:, :, 0].T, cout_p, cin_p)
    ws = pad2(p["ws"][:, :, 0].T, cout_p, cskip_p)
    wrs = jnp.concatenate([wr, ws], axis=-1)
    brs = jnp.concatenate([jnp.pad(p["br"], (0, cin_p - cin)),
                           jnp.pad(p["bs"], (0, cskip_p - cskip))]).reshape(1, -1)
    return wxc, bfg, wrs, brs


def prepare_resblock_params(p, *, kernel_size, compute_dtype=jnp.float32):
    dims = _block_dims(p)
    wxc, bfg, wrs, brs = _fuse_block_params(p, kernel_size, dims)
    return dict(wxc=wxc[None].astype(compute_dtype),
                bfg=bfg[None].astype(jnp.float32),
                wrs=wrs[None].astype(compute_dtype),
                brs=brs[None].astype(jnp.float32), dims=dims)


def prepare_wavenet_params(wp, *, kernel_size, compute_dtype=jnp.float32):
    dims = _block_dims(wp["blocks"][0])
    per = [_fuse_block_params(p, kernel_size, dims) for p in wp["blocks"]]
    return dict(
        wxc=jnp.stack([a[0] for a in per]).astype(compute_dtype),
        bfg=jnp.stack([a[1] for a in per]).astype(jnp.float32),
        wrs=jnp.stack([a[2] for a in per]).astype(compute_dtype),
        brs=jnp.stack([a[3] for a in per]).astype(jnp.float32),
        dims=dims)


def _nct_to_btc_padded(x, c_pad, dtype):
    B, C, T = x.shape
    y = jnp.transpose(x, (0, 2, 1)).astype(dtype)
    if c_pad > C:
        y = jnp.pad(y, ((0, 0), (0, 0), (0, c_pad - C)))
    return y


# ----------------------------------------------------------------------------
# Public wrappers (PyTorch NCT layout at the boundary).
# ----------------------------------------------------------------------------
def resblock_forward(x, c, params, *, kernel_size, dilation, tile_t=None,
                     compute_dtype=jnp.float32,
                     vmem_limit_bytes=64 * 1024 * 1024):
    """ResBlock.forward (causal=True, mode='SAME', local conditioning).

    x: (B, Cin, T), c: (B, Ccin, T) -> ((B, Cin, T), (B, Cskip, T))
    """
    B, cin, T = x.shape
    fused = prepare_resblock_params(params, kernel_size=kernel_size,
                                    compute_dtype=compute_dtype)
    d = fused["dims"]
    if tile_t is None:
        tile_t = T if T <= 512 else 512
    state = jnp.concatenate(
        [_nct_to_btc_padded(x, d["cin_p"], jnp.float32),
         jnp.zeros((B, T, d["cskip_p"]), jnp.float32)], axis=-1)
    c_btc = _nct_to_btc_padded(c, d["ccin_p"], compute_dtype)
    out = _resstack_call(state, c_btc, fused["wxc"], fused["bfg"],
                         fused["wrs"], fused["brs"],
                         kernel_size=kernel_size, dilations=(dilation,),
                         cin_p=d["cin_p"], cout_p=d["cout_p"], tile_t=tile_t,
                         vmem_limit_bytes=vmem_limit_bytes)
    res = jnp.transpose(out[..., :cin], (0, 2, 1))
    skip = jnp.transpose(out[..., d["cin_p"]:d["cin_p"] + d["cskip"]], (0, 2, 1))
    return res, skip


def _causal_conv1d_nct(x, w, b, dilation):
    """PyTorch Conv(..., causal=True, mode='SAME') in NCT layout (pure JAX)."""
    K = w.shape[-1]
    pad = dilation * (K - 1)
    y = lax.conv_general_dilated(x, w, window_strides=(1,), padding=[(pad, 0)],
                                 rhs_dilation=(dilation,),
                                 dimension_numbers=("NCH", "OIH", "NCH"))
    return y + b[None, :, None]


def wavenet_forward(x, c, wp, *, kernel_size, dilations, tile_t,
                    compute_dtype=jnp.float32, layers_per_call=None,
                    vmem_limit_bytes=64 * 1024 * 1024, fused=None):
    """Wavenet.wavenet(x, c): front conv -> fused ResBlock stack -> 1x1 head.

    x: (B, 1, T) audio, c: (B, cin_channels, T) conditioning ALREADY at the
    audio rate.  `layers_per_call=None` fuses the whole stack in one
    pallas_call; set it to chunk the stack when the per-layer weight slab
    does not fit VMEM (e.g. 512-channel production widths on v7x).
    """
    # TODO(synk): Wavenet.upsample (ConvTranspose2d + LeakyReLU pyramid) is not
    # ported to Pallas; pass `c` pre-upsampled to the audio rate instead.
    if fused is None:
        fused = prepare_wavenet_params(wp, kernel_size=kernel_size,
                                       compute_dtype=compute_dtype)
    d = fused["dims"]
    B, _, T = x.shape

    # Front conv (1 -> residual, kernel 32, causal) + ReLU.  Plain JAX: a
    # negligible fraction of the res-block stack FLOPs.
    h = jax.nn.relu(_causal_conv1d_nct(x, wp["front_w"], wp["front_b"], 1))

    # Time-major, lane-padded fused [residual || accumulated skip] state.
    state = jnp.concatenate(
        [_nct_to_btc_padded(h, d["cin_p"], jnp.float32),
         jnp.zeros((B, T, d["cskip_p"]), jnp.float32)], axis=-1)
    c_btc = _nct_to_btc_padded(c, d["ccin_p"], compute_dtype)

    n_layers = len(dilations)
    lpc = n_layers if layers_per_call is None else layers_per_call
    for s in range(0, n_layers, lpc):
        sl = slice(s, min(s + lpc, n_layers))
        state = _resstack_call(
            state, c_btc, fused["wxc"][sl], fused["bfg"][sl],
            fused["wrs"][sl], fused["brs"][sl],
            kernel_size=kernel_size, dilations=tuple(dilations[sl]),
            cin_p=d["cin_p"], cout_p=d["cout_p"], tile_t=tile_t,
            vmem_limit_bytes=vmem_limit_bytes)

    skip = jnp.transpose(state[..., d["cin_p"]:d["cin_p"] + d["cskip"]],
                         (0, 2, 1))                         # (B, cskip, T)

    # Final head: ReLU -> Conv1x1 -> ReLU -> Conv1x1 (plain JAX).
    out = jax.nn.relu(skip)
    out = jax.nn.relu(_causal_conv1d_nct(out, wp["final_w1"], wp["final_b1"], 1))
    out = _causal_conv1d_nct(out, wp["final_w2"], wp["final_b2"], 1)
    return out


# ----------------------------------------------------------------------------
# Pure-JAX references (mirror the PyTorch forward).
# ----------------------------------------------------------------------------
def resblock_reference(x, c, p, *, kernel_size, dilation):
    hf = _causal_conv1d_nct(x, p["wf"], p["bf"], dilation)
    hg = _causal_conv1d_nct(x, p["wg"], p["bg"], dilation)
    hf = hf + _causal_conv1d_nct(c, p["wfc"], p["bfc"], 1)
    hg = hg + _causal_conv1d_nct(c, p["wgc"], p["bgc"], 1)
    out = jnp.tanh(hf) * jax.nn.sigmoid(hg)
    res = _causal_conv1d_nct(out, p["wr"], p["br"], 1)
    skip = _causal_conv1d_nct(out, p["ws"], p["bs"], 1)
    return (x + res) * SQRT_HALF, skip


def wavenet_reference(x, c, wp, *, kernel_size, dilations):
    h = jax.nn.relu(_causal_conv1d_nct(x, wp["front_w"], wp["front_b"], 1))
    skip = 0.0
    for p, d in zip(wp["blocks"], dilations):
        h, s = resblock_reference(h, c, p, kernel_size=kernel_size, dilation=d)
        skip = skip + s
    out = jax.nn.relu(skip)
    out = jax.nn.relu(_causal_conv1d_nct(out, wp["final_w1"], wp["final_b1"], 1))
    out = _causal_conv1d_nct(out, wp["final_w2"], wp["final_b2"], 1)
    return out


# ----------------------------------------------------------------------------
# Demo / correctness check at small shapes.
# ----------------------------------------------------------------------------
if __name__ == "__main__":
    # small Wavenet config: residual = gate = skip = 32, cin_channels = 16,
    # kernel_size = 2, 4 layers (dilations 1,2,4,8), front kernel 32, out = 1.
    B, T = 2, 256
    R, G, Sk, CC = 32, 32, 32, 16
    K = 2
    dilations = (1, 2, 4, 8)
    TILE_T = 64   # small on purpose to exercise the multi-tile causal carry

    keys = iter(jax.random.split(jax.random.PRNGKey(0), 128))

    def rnd(shape, scale=0.1):
        return scale * jax.random.normal(next(keys), shape, jnp.float32)

    def make_block():
        return dict(
            wf=rnd((G, R, K)), bf=rnd((G,)),
            wg=rnd((G, R, K)), bg=rnd((G,)),
            wfc=rnd((G, CC, 1)), bfc=rnd((G,)),
            wgc=rnd((G, CC, 1)), bgc=rnd((G,)),
            wr=rnd((R, G, 1)), br=rnd((R,)),
            ws=rnd((Sk, G, 1)), bs=rnd((Sk,)),
        )

    wparams = dict(
        front_w=rnd((R, 1, 32)), front_b=rnd((R,)),
        blocks=[make_block() for _ in dilations],
        final_w1=rnd((Sk, Sk, 1)), final_b1=rnd((Sk,)),
        final_w2=rnd((1, Sk, 1)), final_b2=rnd((1,)),
    )
    x = jax.random.normal(next(keys), (B, 1, T), jnp.float32)
    c = jax.random.normal(next(keys), (B, CC, T), jnp.float32)

    # 1) single ResBlock vs. pure-JAX reference (f32 MXU operands)
    xr = jax.random.normal(next(keys), (B, R, T), jnp.float32)
    p0 = wparams["blocks"][1]                           # dilation = 2
    res, skip = resblock_forward(xr, c, p0, kernel_size=K, dilation=2,
                                 tile_t=TILE_T)
    jax.block_until_ready((res, skip))
    res_ref, skip_ref = resblock_reference(xr, c, p0, kernel_size=K, dilation=2)
    assert res.shape == (B, R, T) and skip.shape == (B, Sk, T)
    assert jnp.allclose(res, res_ref, atol=1e-4, rtol=1e-4)
    assert jnp.allclose(skip, skip_ref, atol=1e-4, rtol=1e-4)

    # 2) same block with bf16 MXU operands (f32 accumulate + f32 elementwise)
    res16, skip16 = resblock_forward(xr, c, p0, kernel_size=K, dilation=2,
                                     tile_t=TILE_T, compute_dtype=jnp.bfloat16)
    jax.block_until_ready((res16, skip16))
    assert jnp.allclose(res16, res_ref, atol=5e-2, rtol=5e-2)
    assert jnp.allclose(skip16, skip_ref, atol=5e-2, rtol=5e-2)

    # 3) full Wavenet core: front conv -> 4 ResBlocks fused in ONE pallas_call
    #    (state + skip accumulator stay resident across layers) -> 1x1 head.
    out = wavenet_forward(x, c, wparams, kernel_size=K, dilations=dilations,
                          tile_t=TILE_T)
    jax.block_until_ready(out)
    out_ref = wavenet_reference(x, c, wparams, kernel_size=K, dilations=dilations)
    assert out.shape == (B, 1, T)
    assert jnp.allclose(out, out_ref, atol=2e-3, rtol=2e-3)

    print("KERNEL_OK")
</pallas_src>

<mosaic_0001>
module attributes {stable_mosaic.version = 11 : i64} {
  func.func @_resstack_kernel(%arg0: i32, %arg1: i32, %arg2: memref<1x64x256xf32, #tpu.memory_space<vmem>>, %arg3: memref<1x64x128xf32, #tpu.memory_space<vmem>>, %arg4: memref<1x384x256xf32, #tpu.memory_space<vmem>>, %arg5: memref<1x1x256xf32, #tpu.memory_space<vmem>>, %arg6: memref<1x128x256xf32, #tpu.memory_space<vmem>>, %arg7: memref<1x1x256xf32, #tpu.memory_space<vmem>>, %arg8: memref<1x64x256xf32, #tpu.memory_space<vmem>>, %arg9: memref<1x8x128xf32, #tpu.memory_space<vmem>>) attributes {dimension_semantics = [#tpu.dimension_semantics<parallel>, #tpu.dimension_semantics<arbitrary>], iteration_bounds = array<i64: 2, 4>, scalar_prefetch = 0 : i64, scratch_operands = 1 : i64, tpu.core_type = #tpu.core_type<tc>, window_params = [{transform_indices = @transform_0, window_bounds = array<i64: 1, 64, 256>}, {transform_indices = @transform_1, window_bounds = array<i64: 1, 64, 128>}, {pipeline_mode = #tpu.pipeline_mode<synchronous>, transform_indices = @transform_2, window_bounds = array<i64: 1, 384, 256>}, {pipeline_mode = #tpu.pipeline_mode<synchronous>, transform_indices = @transform_3, window_bounds = array<i64: 1, 1, 256>}, {pipeline_mode = #tpu.pipeline_mode<synchronous>, transform_indices = @transform_4, window_bounds = array<i64: 1, 128, 256>}, {pipeline_mode = #tpu.pipeline_mode<synchronous>, transform_indices = @transform_5, window_bounds = array<i64: 1, 1, 256>}, {transform_indices = @transform_6, window_bounds = array<i64: 1, 64, 256>}]} {
    %c0_i32 = arith.constant 0 : i32
    %0 = arith.cmpi eq, %arg1, %c0_i32 : i32
    %1 = arith.extui %0 : i1 to i32
    %c0_i32_0 = arith.constant 0 : i32
    %2 = arith.cmpi ne, %1, %c0_i32_0 : i32
    scf.if %2 {
      %cst_34 = arith.constant 0.000000e+00 : f32
      %55 = vector.broadcast %cst_34 : f32 to vector<1x8x128xf32>
      %c0_35 = arith.constant 0 : index
      %c0_36 = arith.constant 0 : index
      %c0_37 = arith.constant 0 : index
      %56 = vector.load %arg9[%c0_35, %c0_36, %c0_37] : memref<1x8x128xf32, #tpu.memory_space<vmem>>, vector<1x8x128xf32>
      tpu.vector_store %arg9[%c0_35, %c0_36, %c0_37], %55 {strides = array<i32>} : memref<1x8x128xf32, #tpu.memory_space<vmem>>, vector<1x8x128xf32>,
    } else {
    }
    %c0 = arith.constant 0 : index
    %c0_1 = arith.constant 0 : index
    %c0_2 = arith.constant 0 : index
    %3 = vector.load %arg2[%c0, %c0_1, %c0_2] : memref<1x64x256xf32, #tpu.memory_space<vmem>>, vector<1x64x256xf32>
    %4 = vector.shape_cast %3 : vector<1x64x256xf32> to vector<64x256xf32>
    %5 = vector.extract_strided_slice %4 {offsets = [0, 0], sizes = [64, 128], strides = [1, 1]} : vector<64x256xf32> to vector<64x128xf32>
    %6 = vector.extract_strided_slice %4 {offsets = [0, 128], sizes = [64, 128], strides = [1, 1]} : vector<64x256xf32> to vector<64x128xf32>
    %c0_3 = arith.constant 0 : index
    %c0_4 = arith.constant 0 : index
    %c0_5 = arith.constant 0 : index
    %7 = vector.load %arg3[%c0_3, %c0_4, %c0_5] : memref<1x64x128xf32, #tpu.memory_space<vmem>>, vector<1x64x128xf32>
    %8 = vector.shape_cast %7 : vector<1x64x128xf32> to vector<64x128xf32>
    %c0_6 = arith.constant 0 : index
    %c0_7 = arith.constant 0 : index
    %c0_8 = arith.constant 0 : index
    %9 = vector.load %arg9[%c0_6, %c0_7, %c0_8] : memref<1x8x128xf32, #tpu.memory_space<vmem>>, vector<1x8x128xf32>
    %10 = vector.shape_cast %9 : vector<1x8x128xf32> to vector<8x128xf32>
    %11 = vector.extract_strided_slice %5 {offsets = [56, 0], sizes = [8, 128], strides = [1, 1]} : vector<64x128xf32> to vector<8x128xf32>
    %c0_9 = arith.constant 0 : index
    %c0_10 = arith.constant 0 : index
    %c0_11 = arith.constant 0 : index
    %12 = vector.load %arg9[%c0_9, %c0_10, %c0_11] : memref<1x8x128xf32, #tpu.memory_space<vmem>>, vector<1x8x128xf32>
    %13 = vector.shape_cast %12 : vector<1x8x128xf32> to vector<8x128xf32>
    %14 = vector.shape_cast %11 : vector<8x128xf32> to vector<1x8x128xf32>
    tpu.vector_store %arg9[%c0_9, %c0_10, %c0_11], %14 {strides = array<i32>} : memref<1x8x128xf32, #tpu.memory_space<vmem>>, vector<1x8x128xf32>,
    %15 = tpu.concatenate %10, %5 in 0 : vector<8x128xf32>, vector<64x128xf32> -> vector<72x128xf32>
    %16 = vector.extract_strided_slice %15 {offsets = [6, 0], sizes = [64, 128], strides = [1, 1]} : vector<72x128xf32> to vector<64x128xf32>
    %17 = tpu.concatenate %16, %5, %8 in 1 : vector<64x128xf32>, vector<64x128xf32>, vector<64x128xf32> -> vector<64x384xf32>
    %c0_12 = arith.constant 0 : index
    %c0_13 = arith.constant 0 : index
    %c0_14 = arith.constant 0 : index
    %18 = vector.load %arg4[%c0_12, %c0_13, %c0_14] : memref<1x384x256xf32, #tpu.memory_space<vmem>>, vector<1x384x256xf32>
    %19 = vector.shape_cast %18 : vector<1x384x256xf32> to vector<384x256xf32>
    %cst = arith.constant dense<0.000000e+00> : vector<64x256xf32>
    %20 = tpu.matmul %17, %19, %cst {dimension_numbers = #tpu.dot_dimension_numbers<[1], [0], [0], [1], [0, 0, 1, 1], [], []>} : vector<64x384xf32>, vector<384x256xf32>, vector<64x256xf32> -> vector<64x256xf32>
    %c0_15 = arith.constant 0 : index
    %c0_16 = arith.constant 0 : index
    %c0_17 = arith.constant 0 : index
    %21 = vector.load %arg5[%c0_15, %c0_16, %c0_17] : memref<1x1x256xf32, #tpu.memory_space<vmem>>, vector<1x1x256xf32>
    %22 = vector.shape_cast %21 : vector<1x1x256xf32> to vector<1x256xf32>
    %23 = vector.broadcast %22 : vector<1x256xf32> to vector<64x256xf32>
    %24 = arith.addf %20, %23 : vector<64x256xf32>
    %25 = vector.extract_strided_slice %24 {offsets = [0, 128], sizes = [64, 128], strides = [1, 1]} : vector<64x256xf32> to vector<64x128xf32>
    %cst_18 = arith.constant 5.000000e-01 : f32
    %26 = vector.broadcast %cst_18 : f32 to vector<64x128xf32>
    %27 = arith.mulf %26, %25 : vector<64x128xf32>
    %28 = math.tanh %27 : vector<64x128xf32>
    %cst_19 = arith.constant 1.000000e+00 : f32
    %29 = vector.broadcast %cst_19 : f32 to vector<64x128xf32>
    %30 = arith.addf %28, %29 : vector<64x128xf32>
    %cst_20 = arith.constant 5.000000e-01 : f32
    %31 = vector.broadcast %cst_20 : f32 to vector<64x128xf32>
    %32 = arith.mulf %31, %30 : vector<64x128xf32>
    %33 = vector.extract_strided_slice %24 {offsets = [0, 0], sizes = [64, 128], strides = [1, 1]} : vector<64x256xf32> to vector<64x128xf32>
    %34 = math.tanh %33 : vector<64x128xf32>
    %35 = arith.mulf %34, %32 : vector<64x128xf32>
    %c0_21 = arith.constant 0 : index
    %c0_22 = arith.constant 0 : index
    %c0_23 = arith.constant 0 : index
    %36 = vector.load %arg6[%c0_21, %c0_22, %c0_23] : memref<1x128x256xf32, #tpu.memory_space<vmem>>, vector<1x128x256xf32>
    %37 = vector.shape_cast %36 : vector<1x128x256xf32> to vector<128x256xf32>
    %cst_24 = arith.constant dense<0.000000e+00> : vector<64x256xf32>
    %38 = tpu.matmul %35, %37, %cst_24 {dimension_numbers = #tpu.dot_dimension_numbers<[1], [0], [0], [1], [0, 0, 1, 1], [], []>} : vector<64x128xf32>, vector<128x256xf32>, vector<64x256xf32> -> vector<64x256xf32>
    %c0_25 = arith.constant 0 : index
    %c0_26 = arith.constant 0 : index
    %c0_27 = arith.constant 0 : index
    %39 = vector.load %arg7[%c0_25, %c0_26, %c0_27] : memref<1x1x256xf32, #tpu.memory_space<vmem>>, vector<1x1x256xf32>
    %40 = vector.shape_cast %39 : vector<1x1x256xf32> to vector<1x256xf32>
    %41 = vector.broadcast %40 : vector<1x256xf32> to vector<64x256xf32>
    %42 = arith.addf %38, %41 : vector<64x256xf32>
    %43 = vector.extract_strided_slice %42 {offsets = [0, 0], sizes = [64, 128], strides = [1, 1]} : vector<64x256xf32> to vector<64x128xf32>
    %44 = arith.addf %5, %43 : vector<64x128xf32>
    %cst_28 = arith.constant 0.707106769 : f32
    %45 = vector.broadcast %cst_28 : f32 to vector<64x128xf32>
    %46 = arith.mulf %44, %45 : vector<64x128xf32>
    %47 = vector.extract_strided_slice %42 {offsets = [0, 128], sizes = [64, 128], strides = [1, 1]} : vector<64x256xf32> to vector<64x128xf32>
    %48 = arith.addf %6, %47 : vector<64x128xf32>
    %c0_29 = arith.constant 0 : index
    %c0_30 = arith.constant 0 : index
    %c0_31 = arith.constant 0 : index
    %49 = vector.load %arg8[%c0_29, %c0_30, %c0_31] : memref<1x64x256xf32, #tpu.memory_space<vmem>>, vector<1x64x128xf32>
    %50 = vector.shape_cast %49 : vector<1x64x128xf32> to vector<64x128xf32>
    %51 = vector.shape_cast %46 : vector<64x128xf32> to vector<1x64x128xf32>
    tpu.vector_store %arg8[%c0_29, %c0_30, %c0_31], %51 {strides = array<i32>} : memref<1x64x256xf32, #tpu.memory_space<vmem>>, vector<1x64x128xf32>,
    %c0_32 = arith.constant 0 : index
    %c0_33 = arith.constant 0 : index
    %c128 = arith.constant 128 : index
    %52 = vector.load %arg8[%c0_32, %c0_33, %c128] : memref<1x64x256xf32, #tpu.memory_space<vmem>>, vector<1x64x128xf32>
    %53 = vector.shape_cast %52 : vector<1x64x128xf32> to vector<64x128xf32>
    %54 = vector.shape_cast %48 : vector<64x128xf32> to vector<1x64x128xf32>
    tpu.vector_store %arg8[%c0_32, %c0_33, %c128], %54 {strides = array<i32>} : memref<1x64x256xf32, #tpu.memory_space<vmem>>, vector<1x64x128xf32>,
    return
  }
  func.func @transform_0(%arg0: i32, %arg1: i32) -> (i32, i32, i32) {
    %c0_i32 = arith.constant 0 : i32
    %c0_i32_0 = arith.constant 0 : i32
    return %arg0, %arg1, %c0_i32 : i32, i32, i32
  }
  func.func @transform_1(%arg0: i32, %arg1: i32) -> (i32, i32, i32) {
    %c0_i32 = arith.constant 0 : i32
    %c0_i32_0 = arith.constant 0 : i32
    return %arg0, %arg1, %c0_i32 : i32, i32, i32
  }
  func.func @transform_2(%arg0: i32, %arg1: i32) -> (i32, i32, i32) {
    %c0_i32 = arith.constant 0 : i32
    %c0_i32_0 = arith.constant 0 : i32
    %c0_i32_1 = arith.constant 0 : i32
    %c0_i32_2 = arith.constant 0 : i32
    return %c0_i32, %c0_i32_0, %c0_i32_1 : i32, i32, i32
  }
  func.func @transform_3(%arg0: i32, %arg1: i32) -> (i32, i32, i32) {
    %c0_i32 = arith.constant 0 : i32
    %c0_i32_0 = arith.constant 0 : i32
    %c0_i32_1 = arith.constant 0 : i32
    %c0_i32_2 = arith.constant 0 : i32
    return %c0_i32, %c0_i32_0, %c0_i32_1 : i32, i32, i32
  }
  func.func @transform_4(%arg0: i32, %arg1: i32) -> (i32, i32, i32) {
    %c0_i32 = arith.constant 0 : i32
    %c0_i32_0 = arith.constant 0 : i32
    %c0_i32_1 = arith.constant 0 : i32
    %c0_i32_2 = arith.constant 0 : i32
    return %c0_i32, %c0_i32_0, %c0_i32_1 : i32, i32, i32
  }
  func.func @transform_5(%arg0: i32, %arg1: i32) -> (i32, i32, i32) {
    %c0_i32 = arith.constant 0 : i32
    %c0_i32_0 = arith.constant 0 : i32
    %c0_i32_1 = arith.constant 0 : i32
    %c0_i32_2 = arith.constant 0 : i32
    return %c0_i32, %c0_i32_0, %c0_i32_1 : i32, i32, i32
  }
  func.func @transform_6(%arg0: i32, %arg1: i32) -> (i32, i32, i32) {
    %c0_i32 = arith.constant 0 : i32
    %c0_i32_0 = arith.constant 0 : i32
    return %arg0, %arg1, %c0_i32 : i32, i32, i32
  }
}

</mosaic_0001>

<bundles_post_ra>
// kernel: tpu_custom_call.1
= control target key start
LH: loop header
LB: loop body
LE: loop exit
PB: predicated region body
PF: predicated region fallthrough
CT: control target
= control target key end

     0   :  { %s2191_s0 = inlined_call_operand.hbm [shape: f32[2,256,256], index: 0, kind: input, shape index: {}]   ;;  %s2192_s1 = inlined_call_operand.hbm [shape: f32[2,256,128], index: 1, kind: input, shape index: {}]   ;;  %s2193_s2 = inlined_call_operand.hbm [shape: f32[1,384,256], index: 2, kind: input, shape index: {}]   ;;  %s2194_s3 = inlined_call_operand.vmem [shape: f32[1,1,256], index: 3, kind: input, shape index: {}]   ;;  %s2195_s4 = inlined_call_operand.hbm [shape: f32[1,128,256], index: 4, kind: input, shape index: {}]   ;;  %s2196_s5 = inlined_call_operand.vmem [shape: f32[1,1,256], index: 5, kind: input, shape index: {}]   ;;  %s2197_s6 = inlined_call_operand.hbm [shape: f32[2,256,256], index: 6, kind: output, shape index: {}]  }
   0x1   :  { %2210 = sst [smem:[#allocation26_spill]] %s2191_s0 }
   0x2   :  { %2211 = sst [smem:[#allocation27_spill]] %s2193_s2 }
   0x3   :  { %2212 = sst [smem:[#allocation28_spill]] %s2195_s4 }
   0x4   :  { %2213 = sst [smem:[#allocation29_spill]] %s2196_s5 }
   0x5   :  { %2214 = sst [smem:[#allocation30_spill]] %s2197_s6 }
   0x6   :  { %11 = vsyncpa [#allocation4], 0 }
   0x7   :  { %13 = vsyncpa [#allocation4 + $0x1], 0 }
   0x8   :  { %14 = vsyncpa [#allocation7], 0 }
   0x9   :  { %16 = vsyncpa [#allocation7 + $0x1], 0 }
   0xa   :  { %17 = vsyncpa [#allocation10], 0 }
   0xb   :  { %18 = vsyncpa [#allocation5], 0 }
   0xc   :  { %20 = vsyncpa [#allocation5 + $0x1], 0  ;;  %s1692_s21 = smov 0   ;;  %s1694_s22 = smov 0  }
   0xd   :  { %s1696_s23 = smov 0   ;;  %s1698_s24 = smov 0  }
   0xe   :  { %s1700_s25 = smov 0   ;;  %s1702_s26 = smov 0  }
   0xf   :  { %s1704_s27 = smov 0   ;;  %s1706_s28 = smov 0  }
  0x10 LB: > { %2215 = sst [smem:[#allocation17_spill]] %s1618_s21  ;;  %s1733_s29 = sadd.s32 4294967295, %s1646_s28   ;;  %s1646_s28 = sphi %s1706_s28, %s26_s28   ;;  %s1642_s27 = sphi %s1704_s27, %s2251_s27   ;;  %s1638_s26 = sphi %s1702_s26, %s2250_s26   ;;  %s1634_s25 = sphi %s1700_s25, %s2249_s25   ;;  %s1630_s24 = sphi %s1698_s24, %s2248_s24   ;;  %s1626_s23 = sphi %s1696_s23, %s2243_s23   ;;  %s1622_s22 = sphi %s1694_s22, %s2247_s22   ;;  %s1618_s21 = sphi %s1692_s21, %s2246_s21  }
  0x11   : > { %2216 = sst [smem:[#allocation18_spill]] %s1626_s23  ;;  %s1239_s30 = sadd.s32 4294967294, %s1646_s28  }
  0x12   : > { %2217 = sst [smem:[#allocation19_spill]] %s1634_s25  ;;  %p60_p0 = scmp.ne.s32.totalorder %s1622_s22, %s1618_s21 }
  0x13   : > { %2218 = sst [smem:[#allocation20_spill]] %s1646_s28  ;;  %p61_p1 = scmp.eq.s32.totalorder %s1733_s29, 0 }
  0x14   : > { %p198_p2 = scmp.eq.s32.totalorder %s1733_s29, 7  ;;  %p204_p3 = scmp.eq.s32.totalorder %s1239_s30, 7 }
  0x15   : > { %p1742_p4 = por %p61_p1, %p60_p0  ;;  %p1240_p5 = scmp.ge.s32.totalorder %s1646_s28, 1 }
  0x16   : > { %p1747_p6 = por %p204_p3, %p60_p0  ;;  %p211_p7 = scmp.lt.s32.totalorder %s1646_s28, 9 }
  0x17   : > { %s2222_s2 = sld [smem:[#allocation27_spill]]  ;;  %s1648_s13 = smov [#allocation8]  }
  0x18   : > { %s2220_s8 = scalar_select %p1747_p6, 1, 0 }
  0x19   : > { %p1755_p8 = pnand %p1240_p5, %p211_p7  ;;  %s224_s14 = sshll.u32 %s1648_s13, 4  ;;  %s225_s14 = int_to_ptr.vmem [resolvable:$true] %s224_s14 }
  0x1a   : > { %2221 = sst [smem:[#allocation21_spill]] %s2220_s8  ;;  %s2198_s18 = smov 256  }
  0x1b   : > { %p1283_p9 = pneg %p1755_p8  ;;  %s2224_s4 = sld [smem:[#allocation28_spill]] }
  0x1c   : > { %s2199_s19 = smov 16   ;;  %s1651_s20 = smov [#allocation9]  }
  0x1d   : > { %s222_s11 = sshll.u32 %s2222_s2, 4  ;;  %p1284_p10 = pnand %p1283_p9, %p61_p1  ;;  %s223_s11 = int_to_ptr.hbm [resolvable:$true] %s222_s11 }
  0x1e   : > { %s241_s30 = sshll.u32 %s1651_s20, 4  ;;  %s35_s9 = sadd.s32 1, %s1638_s26  ;;  %s242_s30 = int_to_ptr.vmem [resolvable:$true] %s241_s30 }
  0x1f   : > { %1286 = dma.hbm_to_vmem [thread:$0]  (!%p1284_p10), %s223_s11, 12288, %s225_s14, [#allocation7], %s2198_s18, %s2198_s18, %s2199_s19  }
  0x20   : > { %s38_s10 = sadd.s32 1, %s1642_s27  ;;  %p36_p11 = scmp.ge.s32.totalorder %s35_s9, 4 }
  0x21   : > { %s239_s17 = sshll.u32 %s2224_s4, 4  ;;  %s47_s13 = sadd.s32 1, %s1626_s23  ;;  %s240_s17 = int_to_ptr.hbm [resolvable:$true] %s239_s17 }
  0x22   : > { %1289 = dma.hbm_to_vmem [thread:$0]  (!%p1284_p10), %s240_s17, 4096, %s242_s30, [#allocation10], %s2198_s18, %s2198_s18, %s2199_s19  }
  0x23   : > { %p54_p12 = scmp.ne.s32.totalorder %s1626_s23, %s1622_s22  ;;  %p55_p13 = scmp.eq.s32.totalorder %s1646_s28, 0 }
  0x24   : > { %s2253_s9 = smov (%p36_p11, %s35_s9), 0  ;;  %s2255_s10 = smov (!%p36_p11, %s38_s10), %s1642_s27 }
  0x25   : > { %2225 = sst [smem:[#allocation22_spill]] %s2253_s9  ;;  %s43_s11 = ssub.s32 %s1638_s26, %s2253_s9 }
  0x26   : > { %p1783_p0 = por %p55_p13, %p54_p12  ;;  %p40_p3 = scmp.ge.s32.totalorder %s2255_s10, 2 }
  0x27   : > { %p1789_p5 = por %p198_p2, %p54_p12  ;;  %p1303_p7 = scmp.lt.s32.totalorder %s1646_s28, 8 }
  0x28   : > { %s258_s16 = sand.u32 1, %s1626_s23   ;;  %s2257_s10 = smov (%p40_p3, %s2255_s10), 0 }
  0x29   : > { %s2227_s15 = scalar_select %p1789_p5, 1, 0 }
  0x2a   : > { %2229 = sst [smem:[#allocation24_spill]] %s2257_s10  ;;  %s1244_s17 = sshll.u32 %s258_s16, 7 }
  0x2b   : > { %2228 = sst [smem:[#allocation23_spill]] %s2227_s15  ;;  %s42_s20 = ssub.s32 %s1642_s27, %s2257_s10 }
  0x2c   : > { %s44_s30 = sor.u32 %s43_s11, %s42_s20  ;;  %s1267_s18 = sshll.u32 %s1638_s26, 4 }
  0x2d   : > { %p45_p9 = scmp.eq.s32.totalorder %s44_s30, 0  ;;  %s1247_s19 = sshll.u32 %s1642_s27, 6 }
  0x2e   : > { %s268_s2 = sadd.s32 %s1267_s18, %s1247_s19  ;;  %s262_s4 = scalar_lea.vmem [#allocation3], %s1244_s17 }
  0x2f   : > { %s273_s9 = sshll.u32 %s262_s4, 4  ;;  %s1248_s21 = sshll.u32 %s268_s2, 3  ;;  %s274_s9 = int_to_ptr.vmem [resolvable:$true] %s273_s9 }
  0x30   : > { %s1802_s8 = scalar_select %p45_p9, %s1626_s23, %s47_s13  }
  0x31   : > { %s2231_s0 = sld [smem:[#allocation26_spill]]  ;;  %p1811_p2 = pnand %p1303_p7, %p1783_p0 }
  0x32   : > { %2230 = sst [smem:[#allocation25_spill]] %s1802_s8  ;;  %s283_s30 = sand.u32 1, %s1646_s28  }
  0x33   : > { %s259_s18 = scalar_lea.sflag [#allocation4], %s258_s16  ;;  %s2233_s4 = smov 16  }
  0x34   : > { %s2234_s19 = smov 256   ;;  %s1249_s2 = sshll.u32 %s258_s16, 6 }
  0x35   : > { %s1250_s6 = sshll.u32 %s1638_s26, 3  ;;  %s287_s13 = scalar_lea.vmem [#allocation6], %s1249_s2 }
  0x36   : > { %s297_s14 = sshll.u32 %s287_s13, 4  ;;  %s284_s23 = scalar_lea.sflag [#allocation7], %s283_s30  ;;  %s298_s14 = int_to_ptr.vmem [resolvable:$true] %s297_s14 }
  0x37   : > { %s270_s25 = scalar_lea.hbm %s2231_s0, %s1248_s21  ;;  %s1251_s21 = sshll.u32 %s1642_s27, 5 }
  0x38   : > { %s271_s20 = sshll.u32 %s270_s25, 4  ;;  %s292_s15 = sadd.s32 %s1251_s21, %s1250_s6  ;;  %s272_s20 = int_to_ptr.hbm [resolvable:$true] %s271_s20 }
  0x39   : > { %1293 = dma.hbm_to_vmem [thread:$0]  (!%p1811_p2), %s272_s20, 2048, %s274_s9, %s259_s18, %s2234_s19, %s2234_s19, %s2233_s4  }
  0x3a   : > { %s1252_s17 = sshll.u32 %s292_s15, 3  ;;  %s1652_s28 = smov 128  }
  0x3b   : > { %s294_s25 = scalar_lea.hbm %s2192_s1, %s1252_s17  ;;  %s1653_s5 = smov 8  }
  0x3c   : > { %s295_s8 = sshll.u32 %s294_s25, 4  ;;  %309 = sbr.rel (%p1755_p8) target bundleno = 522 (0x20a), region = 44  ;;  %s296_s8 = int_to_ptr.hbm [resolvable:$true] %s295_s8 }
  0x3d   : > { %1296 = dma.hbm_to_vmem [thread:$0]  (!%p1811_p2), %s296_s8, 1024, %s298_s14, %s284_s23, %s1652_s28, %s1652_s28, %s1653_s5  }
  0x3e   : > { %s1831_s9 = sand.u32 (!%p1755_p8), 1, %s1622_s22  }
  0x3f   : > { %s1254_s16 = sshll.u32 (!%p1755_p8), %s1831_s9, 7  ;;  %s312_s20 = scalar_lea.sflag (!%p1755_p8), [#allocation4], %s1831_s9 }
  0x40   : > { %s1835_s0 = scalar_lea.vmem (!%p1755_p8), [#allocation3], %s1254_s16 }
  0x41   : > { %1597 = dma.done.wait (%p1742_p4), %s312_s20, 2048  }
  0x42   : > { %1599 = vsyncadd (%p1742_p4), %s312_s20, 4294965248  ;;  %s321_s5 = sand.u32 1, %s1733_s29   ;;  %s1255_s23 = sshll.u32 %s1831_s9, 6 }
  0x43   : > { %s322_s28 = scalar_lea.sflag [#allocation7], %s321_s5  ;;  %s1843_s8 = scalar_lea.vmem [#allocation6], %s1255_s23 }
  0x44   : > { %1601 = dma.done.wait (%p1742_p4), %s322_s28, 1024  }
  0x45   : > { %1603 = vsyncadd (%p1742_p4), %s322_s28, 4294966272 }
  0x46   : > { %1605 = dma.done.wait (%p61_p1), [#allocation7], 12288  }
  0x47   : > { %1607 = vsyncadd (%p61_p1), [#allocation7], 4294955008 }
  0x48   : > { %1609 = dma.done.wait (%p61_p1), [#allocation10], 4096  }
  0x49   : > { %1611 = vsyncadd (%p61_p1), [#allocation10], 4294963200  ;;  %s1857_s12 = scalar_lea.vmem [#allocation11], %s1254_s16  ;;  %p1259_p8 = scmp.ne.s32.totalorder %s1630_s24, 0 }
  0x4b   : > { %376 = sbr.rel (%p1259_p8) target bundleno = 82 (0x52), region = 64 }
  0x50   : > { %v1654_v0 = vmov 0.0  }
  0x51   : > { %377 = vst [vmem:[#allocation2] sm:$0xff] %v1654_v0 }
  0x52 PF: > { %v481_v1 = vld [vmem:[#allocation8 + $0xf0] sm:$0xff]  ;;  %v479_v3 = vld [vmem:[#allocation8 + $0xe0] sm:$0xff]  ;;  %v1871_v35 = vld [vmem:[%s1843_s8 + $0x8] sm:$0xff]  ;;  %vm412_vm0 = vcmask 1045504   ;;  %vm554_vm1 = vcmask 1041408   ;;  %s2235_s30 = sld [smem:[#allocation29_spill]] }
  0x53   : > { %v545_v2 = vld [vmem:[#allocation8 + $0x2f0] sm:$0xff]  ;;  %630 = vmatpush.msra.mxu0 %v481_v1  ;;  %v543_v5 = vld [vmem:[#allocation8 + $0x2e0] sm:$0xff]  ;;  %v437_v39 = vrot.slane %v1871_v35, 2  ;;  %v482_v55 = vld [vmem:[#allocation8 + $0xf8] sm:$0xff]  ;;  %s2236_s18 = sld [smem:[#allocation19_spill]]  ;;  %s1268_s4 = sshll.u32 %s1630_s24, 4 }
  0x54   : > { %712 = vmatpush.msra.mxu2 %v545_v2  ;;  %v513_v4 = vld [vmem:[#allocation8 + $0x1f0] sm:$0xff]  ;;  %v511_v7 = vld [vmem:[#allocation8 + $0x1e0] sm:$0xff]  ;;  %753 = vmatpush.msra.mxu3 %v482_v55  ;;  %v480_v1 = vld [vmem:[#allocation8 + $0xe8] sm:$0xff]  ;;  %s2237_s13 = sld [smem:[#allocation30_spill]]  ;;  %s1100_s17 = sshll.u32 %s1857_s12, 4  ;;  %s1101_s17 = int_to_ptr.vmem [resolvable:$true] %s1100_s17 }
  0x55   : > { %671 = vmatpush.msra.mxu1 %v513_v4  ;;  %v477_v6 = vld [vmem:[#allocation8 + $0xd0] sm:$0xff]  ;;  %631 = vmatpush.msra.mxu0 %v479_v3  ;;  %v475_v10 = vld [vmem:[#allocation8 + $0xc0] sm:$0xff]  ;;  %v540_v35 = vld [vmem:[#allocation8 + $0x2c8] sm:$0xff]  ;;  %s1085_s16 = scalar_lea.sflag [#allocation5], %s1831_s9 }
  0x56   : > { %v541_v8 = vld [vmem:[#allocation8 + $0x2d0] sm:$0xff]  ;;  %713 = vmatpush.msra.mxu2 %v543_v5  ;;  %v539_v11 = vld [vmem:[#allocation8 + $0x2c0] sm:$0xff]  ;;  %v478_v5 = vld [vmem:[#allocation8 + $0xd8] sm:$0xff]  ;;  %754 = vmatpush.msra.mxu3 %v480_v1 }
  0x57   : > { %v509_v9 = vld [vmem:[#allocation8 + $0x1d0] sm:$0xff]  ;;  %672 = vmatpush.msra.mxu1 %v511_v7  ;;  %632 = vmatpush.msra.mxu0 %v477_v6  ;;  %v507_v12 = vld [vmem:[#allocation8 + $0x1c0] sm:$0xff]  ;;  %v500_v55 = vld [vmem:[#allocation8 + $0x188] sm:$0xff] }
  0x58   : > { %714 = vmatpush.msra.mxu2 %v541_v8  ;;  %v473_v13 = vld [vmem:[#allocation8 + $0xb0] sm:$0xff]  ;;  %v471_v16 = vld [vmem:[#allocation8 + $0xa0] sm:$0xff]  ;;  %v1863_v31 = vld [vmem:[#allocation2] sm:$0xff]  ;;  %755 = vmatpush.msra.mxu3 %v478_v5 }
  0x59   : > { %673 = vmatpush.msra.mxu1 %v509_v9  ;;  %v537_v14 = vld [vmem:[#allocation8 + $0x2b0] sm:$0xff]  ;;  %633 = vmatpush.msra.mxu0 %v475_v10  ;;  %v535_v17 = vld [vmem:[#allocation8 + $0x2a0] sm:$0xff]  ;;  %v555_v57 = vrot.slane %v1863_v31, 6  ;;  %v508_v31 = vld [vmem:[#allocation8 + $0x1c8] sm:$0xff]  ;;  %s1263_s19 = sshll.u32 %s2236_s18, 6 }
  0x5a   : > { %715 = vmatpush.msra.mxu2 %v539_v11  ;;  %v505_v15 = vld [vmem:[#allocation8 + $0x1b0] sm:$0xff]  ;;  %v503_v18 = vld [vmem:[#allocation8 + $0x1a0] sm:$0xff]  ;;  %v514_v11 = vld [vmem:[#allocation8 + $0x1f8] sm:$0xff]  ;;  %s1097_s2 = sadd.s32 %s1268_s4, %s1263_s19  ;;  %s1556_s28 = scalar_lea.hbm %s2237_s13, 1024 }
  0x5b   : > { %674 = vmatpush.msra.mxu1 %v507_v12  ;;  %634 = vmatpush.msra.mxu0 %v473_v13  ;;  %v469_v19 = vld [vmem:[#allocation8 + $0x90] sm:$0xff]  ;;  %v467_v22 = vld [vmem:[#allocation8 + $0x80] sm:$0xff]  ;;  %v530_v1 = vld [vmem:[#allocation8 + $0x278] sm:$0xff]  ;;  %s1264_s6 = sshll.u32 %s1097_s2, 3 }
  0x5c   : > { %716 = vmatpush.msra.mxu2 %v537_v14  ;;  %v533_v20 = vld [vmem:[#allocation8 + $0x290] sm:$0xff]  ;;  %v531_v23 = vld [vmem:[#allocation8 + $0x280] sm:$0xff]  ;;  %s1099_s14 = scalar_lea.hbm %s2237_s13, %s1264_s6 }
  0x5d   : > { %675 = vmatpush.msra.mxu1 %v505_v15  ;;  %635 = vmatpush.msra.mxu0 %v471_v16  ;;  %v501_v21 = vld [vmem:[#allocation8 + $0x190] sm:$0xff]  ;;  %v499_v24 = vld [vmem:[#allocation8 + $0x180] sm:$0xff]  ;;  %v1910_v15 = vld [vmem:[%s1843_s8 + $0x18] sm:$0xff]  ;;  %s1102_s25 = sshll.u32 %s1099_s14, 4  ;;  %s1103_s25 = int_to_ptr.hbm [resolvable:$true] %s1102_s25 }
  0x5e   : > { %717 = vmatpush.msra.mxu2 %v535_v17  ;;  %v465_v25 = vld [vmem:[#allocation8 + $0x70] sm:$0xff]  ;;  %v463_v27 = vld [vmem:[#allocation8 + $0x60] sm:$0xff]  ;;  %v476_v16 = vld [vmem:[#allocation8 + $0xc8] sm:$0xff]  ;;  %s1550_s20 = sshra.s32 %s1103_s25, 4  ;;  %s1551_s20 = int_to_ptr.hbm [resolvable:$true] %s1550_s20 }
  0x5f   : > { %676 = vmatpush.msra.mxu1 %v503_v18  ;;  %636 = vmatpush.msra.mxu0 %v469_v19  ;;  %v529_v26 = vld [vmem:[#allocation8 + $0x270] sm:$0xff]  ;;  %v527_v29 = vld [vmem:[#allocation8 + $0x260] sm:$0xff]  ;;  %v546_v17 = vld [vmem:[#allocation8 + $0x2f8] sm:$0xff]  ;;  %p1557_p11 = scmp.lt.s32.totalorder %s1551_s20, %s2237_s13 }
  0x60   : > { %718 = vmatpush.msra.mxu2 %v533_v20  ;;  %v497_v28 = vld [vmem:[#allocation8 + $0x170] sm:$0xff]  ;;  %v394_v32 = vld [vmem:[%s1843_s8] sm:$0xff]  ;;  %v512_v18 = vld [vmem:[#allocation8 + $0x1e8] sm:$0xff]  ;;  %756 = vmatpush.msra.mxu3 %v476_v16 }
  0x61   : > { %677 = vmatpush.msra.mxu1 %v501_v21  ;;  %637 = vmatpush.msra.mxu0 %v467_v22  ;;  %v1861_v30 = vld [vmem:[%s1835_s0 + $0x70] sm:$0xff]  ;;  %v495_v33 = vld [vmem:[#allocation8 + $0x160] sm:$0xff]  ;;  %v436_v38 = vrot.slane %v394_v32, 2  ;;  %v526_v16 = vld [vmem:[#allocation8 + $0x258] sm:$0xff] }
  0x62   : > { %719 = vmatpush.msra.mxu2 %v531_v23  ;;  %v1867_v34 = vld [vmem:[%s1835_s0] sm:$0xff]  ;;  %403 = vst [vmem:[#allocation2] sm:$0xff] %v1861_v30  ;;  %v461_v36 = vld [vmem:[#allocation8 + $0x50] sm:$0xff]  ;;  %v474_v23 = vld [vmem:[#allocation8 + $0xb8] sm:$0xff] }
  0x63   : > { %678 = vmatpush.msra.mxu1 %v499_v24  ;;  %638 = vmatpush.msra.mxu0 %v465_v25  ;;  %v525_v37 = vld [vmem:[#allocation8 + $0x250] sm:$0xff]  ;;  %v459_v42 = vld [vmem:[#allocation8 + $0x40] sm:$0xff]  ;;  %v413_v44 = vrot.slane %v1867_v34, 2  ;;  %v1880_v49 = vsel %vm412_vm0, %v436_v38, %v437_v39  ;;  %v556_v58 = vrot.slane %v1867_v34, 6  ;;  %v561_v59 = vrot.slane %v436_v38, 6  ;;  %v544_v24 = vld [vmem:[#allocation8 + $0x2e8] sm:$0xff] }
  0x64   : > { %720 = vmatpush.msra.mxu2 %v529_v26  ;;  %v1875_v40 = vld [vmem:[%s1835_s0 + $0x10] sm:$0xff]  ;;  %v523_v43 = vld [vmem:[#allocation8 + $0x240] sm:$0xff]  ;;  %v562_v60 = vrot.slane %v1880_v49, 6  ;;  %v510_v25 = vld [vmem:[#allocation8 + $0x1d8] sm:$0xff]  ;;  %v441_v26 = vrot.slane %v1910_v15, 2  ;;  %757 = vmatpush.msra.mxu3 %v474_v23 }
  0x65   : > { %679 = vmatpush.msra.mxu1 %v497_v28  ;;  %639 = vmatpush.msra.mxu0 %v463_v27  ;;  %v493_v41 = vld [vmem:[#allocation8 + $0x150] sm:$0xff]  ;;  %v414_v45 = vrot.slane %v1875_v40, 2  ;;  %v491_v46 = vld [vmem:[#allocation8 + $0x140] sm:$0xff]  ;;  %v558_v3 = vrot.slane %v413_v44, 6  ;;  %v1898_v9 = vsel %vm554_vm1, %v555_v57, %v556_v58  ;;  %v564_v20 = vrot.slane %v1875_v40, 6  ;;  %v472_v28 = vld [vmem:[#allocation8 + $0xa8] sm:$0xff] }
  0x66   : > { %721 = vmatpush.msra.mxu2 %v527_v29  ;;  %v457_v47 = vld [vmem:[#allocation8 + $0x30] sm:$0xff]  ;;  %v455_v52 = vld [vmem:[#allocation8 + $0x20] sm:$0xff]  ;;  %v1901_v10 = vsel %vm554_vm1, %v561_v59, %v562_v60  ;;  %v542_v29 = vld [vmem:[#allocation8 + $0x2d8] sm:$0xff]  ;;  %758 = vmatpush.msra.mxu3 %v472_v28 }
  0x67   : > { %680 = vmatpush.msra.mxu1 %v495_v33  ;;  %640 = vmatpush.msra.mxu0 %v461_v36  ;;  %v521_v48 = vld [vmem:[#allocation8 + $0x230] sm:$0xff]  ;;  %v519_v53 = vld [vmem:[#allocation8 + $0x220] sm:$0xff]  ;;  %v1886_v54 = vsel %vm412_vm0, %v413_v44, %v414_v45  ;;  %v1927_v33 = vsel %vm554_vm1, %v556_v58, %v564_v20  ;;  %v470_v40 = vld [vmem:[#allocation8 + $0x98] sm:$0xff] }
  0x68   : > { %722 = vmatpush.msra.mxu2 %v525_v37  ;;  %v489_v50 = vld [vmem:[#allocation8 + $0x130] sm:$0xff]  ;;  %v487_v56 = vld [vmem:[#allocation8 + $0x120] sm:$0xff]  ;;  %v559_v4 = vrot.slane %v1886_v54, 6  ;;  %v506_v37 = vld [vmem:[#allocation8 + $0x1b8] sm:$0xff]  ;;  %759 = vmatpush.msra.mxu3 %v470_v40 }
  0x69   : > { %681 = vmatpush.msra.mxu1 %v493_v41  ;;  %641 = vmatpush.msra.mxu0 %v459_v42  ;;  %v1883_v51 = vld [vmem:[%s1843_s8 + $0x10] sm:$0xff]  ;;  %v1892_v61 = vld [vmem:[%s1835_s0 + $0x20] sm:$0xff]  ;;  %v538_v42 = vld [vmem:[#allocation8 + $0x2b8] sm:$0xff] }
  0x6a   : > { %723 = vmatpush.msra.mxu2 %v523_v43  ;;  %v453_v62 = vld [vmem:[#allocation8 + $0x10] sm:$0xff]  ;;  %v439_v0 = vrot.slane %v1883_v51, 2  ;;  %v451_v6 = vld [vmem:[#allocation8] sm:$0xff]  ;;  %v416_v8 = vrot.slane %v1892_v61, 2  ;;  %v1907_v14 = vsel %vm554_vm1, %v558_v3, %v559_v4  ;;  %v504_v43 = vld [vmem:[#allocation8 + $0x1a8] sm:$0xff]  ;;  %v570_v44 = vrot.slane %v1892_v61, 6 }
  0x6b   : > { %682 = vmatpush.msra.mxu1 %v491_v46  ;;  %642 = vmatpush.msra.mxu0 %v457_v47  ;;  %v517_v63 = vld [vmem:[#allocation8 + $0x210] sm:$0xff]  ;;  %v515_v7 = vld [vmem:[#allocation8 + $0x200] sm:$0xff]  ;;  %v468_v47 = vld [vmem:[#allocation8 + $0x88] sm:$0xff] }
  0x6c   : > { %724 = vmatpush.msra.mxu2 %v521_v48  ;;  %v485_v2 = vld [vmem:[#allocation8 + $0x110] sm:$0xff]  ;;  %v483_v12 = vld [vmem:[#allocation8 + $0x100] sm:$0xff]  ;;  %v1904_v13 = vsel %vm412_vm0, %v437_v39, %v439_v0  ;;  %v1915_v19 = vsel %vm412_vm0, %v414_v45, %v416_v8  ;;  %v1933_v36 = vsel %vm412_vm0, %v439_v0, %v441_v26  ;;  %v536_v48 = vld [vmem:[#allocation8 + $0x2a8] sm:$0xff]  ;;  %760 = vmatpush.msra.mxu3 %v468_v47 }
  0x6d   : > { %683 = vmatpush.msra.mxu1 %v489_v50  ;;  %643 = vmatpush.msra.mxu0 %v455_v52  ;;  %v568_v21 = vrot.slane %v1904_v13, 6  ;;  %v1920_v22 = vld [vmem:[%s1835_s0 + $0x30] sm:$0xff]  ;;  %v566_v27 = vrot.slane %v1915_v19, 6  ;;  %v1939_v39 = vld [vmem:[%s1843_s8 + $0x20] sm:$0xff]  ;;  %v574_v45 = vrot.slane %v1933_v36, 6  ;;  %v502_v50 = vld [vmem:[#allocation8 + $0x198] sm:$0xff] }
  0x6e   : > { %725 = vmatpush.msra.mxu2 %v519_v53  ;;  %v418_v32 = vrot.slane %v1920_v22, 2  ;;  %v1949_v46 = vld [vmem:[%s1835_s0 + $0x40] sm:$0xff]  ;;  %v443_v49 = vrot.slane %v1939_v39, 2  ;;  %v466_v52 = vld [vmem:[#allocation8 + $0x78] sm:$0xff]  ;;  %v532_v59 = vld [vmem:[#allocation8 + $0x288] sm:$0xff]  ;;  %v576_v3 = vrot.slane %v1920_v22, 6 }
  0x6f   : > { %684 = vmatpush.msra.mxu1 %v487_v56  ;;  %644 = vmatpush.msra.mxu0 %v453_v62  ;;  %v1930_v34 = vsel %vm554_vm1, %v562_v60, %v568_v21  ;;  %v1936_v38 = vsel %vm554_vm1, %v559_v4, %v566_v27  ;;  %v420_v53 = vrot.slane %v1949_v46, 2  ;;  %v534_v54 = vld [vmem:[#allocation8 + $0x298] sm:$0xff]  ;;  %v1956_v56 = vsel %vm554_vm1, %v564_v20, %v570_v44  ;;  %v1968_v62 = vld [vmem:[%s1843_s8 + $0x28] sm:$0xff]  ;;  %v1978_v5 = vld [vmem:[%s1835_s0 + $0x50] sm:$0xff] }
  0x70   : > { %726 = vmatpush.msra.mxu2 %v517_v63  ;;  %v1944_v41 = vsel %vm412_vm0, %v416_v8, %v418_v32  ;;  %v1959_v57 = vsel %vm554_vm1, %v568_v21, %v574_v45  ;;  %v1962_v58 = vsel %vm412_vm0, %v441_v26, %v443_v49  ;;  %v498_v60 = vld [vmem:[#allocation8 + $0x178] sm:$0xff]  ;;  %761 = vmatpush.msra.mxu3 %v466_v52  ;;  %v464_v63 = vld [vmem:[#allocation8 + $0x68] sm:$0xff]  ;;  %v422_v15 = vrot.slane %v1978_v5, 2 }
  0x71   : > { %685 = vmatpush.msra.mxu1 %v485_v2  ;;  %645 = vmatpush.msra.mxu0 %v451_v6  ;;  %v572_v51 = vrot.slane %v1944_v41, 6  ;;  %v1973_v0 = vsel %vm412_vm0, %v418_v32, %v420_v53  ;;  %v496_v2 = vld [vmem:[#allocation8 + $0x168] sm:$0xff]  ;;  %v580_v4 = vrot.slane %v1962_v58, 6  ;;  %v462_v6 = vld [vmem:[#allocation8 + $0x58] sm:$0xff] }
  0x72   : > { %727 = vmatpush.msra.mxu2 %v515_v7  ;;  %646 = vmatmul.f32.vlgmr.msra.gmra.mxu0 %v1898_v9  ;;  %v445_v7 = vrot.slane %v1968_v62, 2  ;;  %v528_v8 = vld [vmem:[#allocation8 + $0x268] sm:$0xff]  ;;  %v490_v23 = vld [vmem:[#allocation8 + $0x138] sm:$0xff]  ;;  %v426_v62 = vrot.slane %v1861_v30, 2 }
  0x73   : > { %728 = vmatmul.f32.vlgmr.msra.gmra.mxu2 %v1901_v10  ;;  %794 = vmatpush.msrb.mxu0 %v514_v11  ;;  %v1965_v61 = vsel %vm554_vm1, %v566_v27, %v572_v51  ;;  %v494_v11 = vld [vmem:[#allocation8 + $0x158] sm:$0xff]  ;;  %v460_v13 = vld [vmem:[#allocation8 + $0x48] sm:$0xff]  ;;  %v1988_v19 = vsel %vm554_vm1, %v574_v45, %v580_v4  ;;  %v423_v27 = vsel %vm412_vm0, %v420_v53, %v422_v15 }
  0x74   : > { %686 = vmatpush.msra.mxu1 %v483_v12  ;;  %762 = vmatpush.msra.mxu3 %v464_v63  ;;  %v578_v12 = vrot.slane %v1973_v0, 6  ;;  %v446_v20 = vsel %vm412_vm0, %v443_v49, %v445_v7  ;;  %v524_v21 = vld [vmem:[#allocation8 + $0x248] sm:$0xff]  ;;  %v458_v26 = vld [vmem:[#allocation8 + $0x38] sm:$0xff]  ;;  %v584_v41 = vrot.slane %v423_v27, 6 }
  0x75   : > { %687 = vmatmul.f32.vlgmr.msra.gmra.mxu1 %v1907_v14  ;;  %795 = vmatpush.msrb.mxu0 %v512_v18  ;;  %v1985_v18 = vsel %vm554_vm1, %v570_v44, %v576_v3  ;;  %v522_v28 = vld [vmem:[#allocation8 + $0x238] sm:$0xff]  ;;  %v586_v32 = vrot.slane %v446_v20, 6  ;;  %v456_v36 = vld [vmem:[#allocation8 + $0x28] sm:$0xff]  ;;  %v948_v20 = vld [vmem:[#allocation9 + $0xc0] sm:$0xff] }
  0x76   : > { %835 = vmatpush.msrb.mxu1 %v546_v17  ;;  %v492_v17 = vld [vmem:[#allocation8 + $0x148] sm:$0xff]  ;;  %763 = vmatpush.msra.mxu3 %v462_v6  ;;  %v486_v40 = vld [vmem:[#allocation8 + $0x118] sm:$0xff]  ;;  %v585_v52 = vsel %vm554_vm1, %v578_v12, %v584_v41 }
  0x77   : > { %796 = vmatpush.msrb.mxu0 %v510_v25  ;;  %v400_v25 = vld [vmem:[%s1843_s8 + $0x30] sm:$0xff]  ;;  %v520_v39 = vld [vmem:[#allocation8 + $0x228] sm:$0xff]  ;;  %v518_v44 = vld [vmem:[#allocation8 + $0x218] sm:$0xff] }
  0x78   : > { %836 = vmatpush.msrb.mxu1 %v544_v24  ;;  %764 = vmatpush.msra.mxu3 %v460_v13  ;;  %v1992_v24 = vsel %vm554_vm1, %v572_v51, %v578_v12  ;;  %v484_v45 = vld [vmem:[#allocation8 + $0x108] sm:$0xff]  ;;  %v401_v53 = vld [vmem:[%s1843_s8 + $0x38] sm:$0xff]  ;;  %v600_v12 = vrot.slane %v1861_v30, 6  ;;  %v954_v30 = vld [vmem:[#allocation9 + $0xf0] sm:$0xff] }
  0x79   : > { %797 = vmatpush.msrb.mxu0 %v508_v31  ;;  %v582_v31 = vrot.slane %v1949_v46, 6  ;;  %v516_v51 = vld [vmem:[#allocation8 + $0x208] sm:$0xff]  ;;  %962 = vmatpush.msrb.mxu2 %v954_v30  ;;  %v924_v30 = vld [vmem:[#allocation9] sm:$0xff] }
  0x7a   : > { %837 = vmatpush.msrb.mxu1 %v542_v29  ;;  %649 = vmatmul.f32.gmra.mxu0 %v1927_v33  ;;  %v488_v29 = vld [vmem:[#allocation8 + $0x128] sm:$0xff] }
  0x7b   : > { %731 = vmatmul.f32.gmra.mxu2 %v1930_v34  ;;  %798 = vmatpush.msrb.mxu0 %v506_v37  ;;  %v447_v37 = vrot.slane %v400_v25, 2  ;;  %v583_v47 = vsel %vm554_vm1, %v576_v3, %v582_v31  ;;  %v946_v25 = vld [vmem:[#allocation9 + $0xb0] sm:$0xff] }
  0x7c   : > { %838 = vmatpush.msrb.mxu1 %v540_v35  ;;  %v2000_v35 = vld [vmem:[%s1835_s0 + $0x60] sm:$0xff]  ;;  %765 = vmatpush.msra.mxu3 %v458_v26 }
  0x7d   : > { %690 = vmatmul.f32.gmra.mxu1 %v1936_v38  ;;  %799 = vmatpush.msrb.mxu0 %v504_v43  ;;  %v424_v43 = vrot.slane %v2000_v35, 2  ;;  %v448_v49 = vsel %vm412_vm0, %v445_v7, %v447_v37 }
  0x7e   : > { %839 = vmatpush.msrb.mxu1 %v538_v42  ;;  %v454_v42 = vld [vmem:[#allocation8 + $0x18] sm:$0xff]  ;;  %766 = vmatpush.msra.mxu3 %v456_v36  ;;  %v592_v58 = vrot.slane %v448_v49, 6  ;;  %v945_v36 = vld [vmem:[#allocation9 + $0xa8] sm:$0xff] }
  0x7f   : > { %800 = vmatpush.msrb.mxu0 %v502_v50  ;;  %v452_v50 = vld [vmem:[#allocation8 + $0x8] sm:$0xff]  ;;  %v427_v3 = vsel %vm412_vm0, %v424_v43, %v426_v62 }
  0x80   : > { %840 = vmatpush.msrb.mxu1 %v536_v48  ;;  %v2006_v48 = vsel %vm554_vm1, %v580_v4, %v586_v32  ;;  %767 = vmatpush.msra.mxu3 %v454_v42  ;;  %v593_v0 = vsel %vm554_vm1, %v586_v32, %v592_v58  ;;  %v594_v4 = vrot.slane %v2000_v35, 6  ;;  %v940_v42 = vld [vmem:[#allocation9 + $0x80] sm:$0xff] }
  0x81   : > { %801 = vmatpush.msrb.mxu0 %v500_v55  ;;  %v588_v55 = vrot.slane %v1978_v5, 6 }
  0x82   : > { %841 = vmatpush.msrb.mxu1 %v534_v54  ;;  %652 = vmatmul.f32.gmra.mxu0 %v1956_v56  ;;  %v425_v54 = vsel %vm412_vm0, %v422_v15, %v424_v43  ;;  %v602_v15 = vrot.slane %v426_v62, 6  ;;  %v932_v62 = vld [vmem:[#allocation9 + $0x40] sm:$0xff] }
  0x83   : > { %734 = vmatmul.f32.gmra.mxu2 %v1959_v57  ;;  %802 = vmatpush.msrb.mxu0 %v498_v60  ;;  %v590_v60 = vrot.slane %v425_v54, 6  ;;  %v589_v63 = vsel %vm554_vm1, %v582_v31, %v588_v55  ;;  %v595_v7 = vsel %vm554_vm1, %v588_v55, %v594_v4  ;;  %v937_v54 = vld [vmem:[#allocation9 + $0x68] sm:$0xff]  ;;  %v934_v55 = vld [vmem:[#allocation9 + $0x50] sm:$0xff] }
  0x84   : > { %842 = vmatpush.msrb.mxu1 %v532_v59  ;;  %768 = vmatpush.msra.mxu3 %v452_v50  ;;  %v449_v59 = vrot.slane %v401_v53, 2  ;;  %v939_v50 = vld [vmem:[#allocation9 + $0x78] sm:$0xff] }
  0x85   : > { %693 = vmatmul.f32.gmra.mxu1 %v1965_v61  ;;  %803 = vmatpush.msrb.mxu0 %v496_v2  ;;  %v591_v2 = vsel %vm554_vm1, %v584_v41, %v590_v60  ;;  %v943_v41 = vld [vmem:[#allocation9 + $0x98] sm:$0xff] }
  0x86   : > { %843 = vmatpush.msrb.mxu1 %v530_v1  ;;  %769 = vmatmul.f32.vlgmr.msra.gmra.mxu3 %v1898_v9  ;;  %v450_v1 = vsel %vm412_vm0, %v447_v37, %v449_v59  ;;  %v596_v9 = vrot.slane %v427_v3, 6  ;;  %v604_v13 = vrot.slane %v449_v59, 6  ;;  %v942_v37 = vld [vmem:[#allocation9 + $0x90] sm:$0xff] }
  0x87   : > { %804 = vmatpush.msrb.mxu0 %v494_v11  ;;  %v598_v6 = vrot.slane %v450_v1, 6 }
  0x88   : > { %844 = vmatpush.msrb.mxu1 %v528_v8  ;;  %v597_v11 = vsel %vm554_vm1, %v590_v60, %v596_v9  ;;  %v935_v60 = vld [vmem:[#allocation9 + $0x58] sm:$0xff] }
  0x89   : > { %805 = vmatpush.msrb.mxu0 %v492_v17  ;;  %v599_v8 = vsel %vm554_vm1, %v592_v58, %v598_v6  ;;  %v603_v17 = vsel %vm554_vm1, %v596_v9, %v602_v15  ;;  %v926_v15 = vld [vmem:[#allocation9 + $0x10] sm:$0xff] }
  0x8a   : > { %845 = vmatpush.msrb.mxu1 %v526_v16  ;;  %655 = vmatmul.f32.gmra.mxu0 %v1985_v18  ;;  %v601_v16 = vsel %vm554_vm1, %v594_v4, %v600_v12  ;;  %v933_v4 = vld [vmem:[#allocation9 + $0x48] sm:$0xff] }
  0x8b   : > { %737 = vmatmul.f32.gmra.mxu2 %v1988_v19  ;;  %806 = vmatpush.msrb.mxu0 %v490_v23  ;;  %v929_v12 = vld [vmem:[#allocation9 + $0x28] sm:$0xff] }
  0x8c   : > { %846 = vmatpush.msrb.mxu1 %v524_v21 }
  0x8d   : > { %696 = vmatmul.f32.gmra.mxu1 %v1992_v24  ;;  %807 = vmatpush.msrb.mxu0 %v488_v29  ;;  %v944_v29 = vld [vmem:[#allocation9 + $0xa0] sm:$0xff] }
  0x8e   : > { %847 = vmatpush.msrb.mxu1 %v522_v28  ;;  %772 = vmatmul.f32.gmra.mxu3 %v1927_v33  ;;  %v605_v33 = vsel %vm554_vm1, %v598_v6, %v604_v13  ;;  %v947_v28 = vld [vmem:[#allocation9 + $0xb8] sm:$0xff] }
  0x8f   : > { %808 = vmatpush.msrb.mxu0 %v486_v40 }
  0x90   : > { %848 = vmatpush.msrb.mxu1 %v520_v39 }
  0x91   : > { %809 = vmatpush.msrb.mxu0 %v484_v45  ;;  %v941_v45 = vld [vmem:[#allocation9 + $0x88] sm:$0xff] }
  0x92   : > { %849 = vmatpush.msrb.mxu1 %v518_v44  ;;  %658 = vmatmul.f32.gmra.mxu0 %v583_v47 }
  0x93   : > { %740 = vmatmul.f32.gmra.mxu2 %v2006_v48 }
  0x94   : > { %850 = vmatpush.msrb.mxu1 %v516_v51  ;;  %v936_v51 = vld [vmem:[#allocation9 + $0x60] sm:$0xff] }
  0x95   : > { %699 = vmatmul.f32.gmra.mxu1 %v585_v52 }
  0x96   : > { %775 = vmatmul.f32.gmra.mxu3 %v1956_v56  ;;  %v950_v56 = vld [vmem:[#allocation9 + $0xd0] sm:$0xff] }
  0x9a   : > { %661 = vmatmul.f32.gmra.mxu0 %v589_v63 }
  0x9b   : > { %743 = vmatmul.f32.gmra.mxu2 %v593_v0 }
  0x9d   : > { %702 = vmatmul.f32.gmra.mxu1 %v591_v2 }
  0x9e   : > { %778 = vmatmul.f32.gmra.mxu3 %v1985_v18 }
  0xa2   : > { %664 = vmatmul.f32.gmra.mxu0 %v595_v7 }
  0xa3   : > { %746 = vmatmul.f32.gmra.mxu2 %v599_v8 }
  0xa5   : > { %705 = vmatmul.f32.gmra.mxu1 %v597_v11 }
  0xa6   : > { %781 = vmatmul.f32.gmra.mxu3 %v583_v47  ;;  %v938_v47 = vld [vmem:[#allocation9 + $0x70] sm:$0xff] }
  0xaa   : > { %667 = vmatmul.f32.gmra.mxu0 %v601_v16 }
  0xab   : > { %749 = vmatmul.f32.gmra.mxu2 %v605_v33 }
  0xad   : > { %708 = vmatmul.f32.gmra.mxu1 %v603_v17 }
  0xae   : > { %784 = vmatmul.f32.gmra.mxu3 %v589_v63 }
  0xb2   : > { %810 = vmatmul.f32.vlgmr.msrb.gmra.mxu0 %v1907_v14  ;;  %v952_v14 = vld [vmem:[#allocation9 + $0xe0] sm:$0xff] }
  0xb3   : > { %963 = vmatpush.msrb.mxu2 %v952_v14 }
  0xb5   : > { %851 = vmatmul.f32.vlgmr.msrb.gmra.mxu1 %v1901_v10  ;;  %v955_v10 = vld [vmem:[#allocation9 + $0xf8] sm:$0xff]  ;;  %964 = vmatpush.msrb.mxu2 %v950_v56 }
  0xb6   : > { %787 = vmatmul.f32.gmra.mxu3 %v595_v7  ;;  %v930_v7 = vld [vmem:[#allocation9 + $0x30] sm:$0xff] }
  0xb7   : > { %1003 = vmatpush.msrb.mxu3 %v955_v10  ;;  %965 = vmatpush.msrb.mxu2 %v948_v20  ;;  %v925_v10 = vld [vmem:[#allocation9 + $0x8] sm:$0xff] }
  0xb9   : > { %966 = vmatpush.msrb.mxu2 %v946_v25 }
  0xba   : > { %813 = vmatmul.f32.gmra.mxu0 %v1936_v38  ;;  %v953_v38 = vld [vmem:[#allocation9 + $0xe8] sm:$0xff] }
  0xbb   : > { %1004 = vmatpush.msrb.mxu3 %v953_v38  ;;  %967 = vmatpush.msrb.mxu2 %v944_v29 }
  0xbd   : > { %854 = vmatmul.f32.gmra.mxu1 %v1930_v34  ;;  %v2044_v34 = vld [vmem:[%s2194_s3] sm:$0x3]  ;;  %968 = vmatpush.msrb.mxu2 %v942_v37 }
  0xbe   : > { %790 = vmatmul.f32.gmra.mxu3 %v601_v16  ;;  %v927_v16 = vld [vmem:[#allocation9 + $0x18] sm:$0xff] }
  0xbf   : > { %969 = vmatpush.msrb.mxu2 %v940_v42 }
  0xc1   : > { %970 = vmatpush.msrb.mxu2 %v938_v47 }
  0xc2   : > { %816 = vmatmul.f32.gmra.mxu0 %v1965_v61 }
  0xc3   : > { %971 = vmatpush.msrb.mxu2 %v936_v51 }
  0xc5   : > { %857 = vmatmul.f32.gmra.mxu1 %v1959_v57  ;;  %v2047_v57 = vperm.slane %v2044_v34, 0  ;;  %972 = vmatpush.msrb.mxu2 %v934_v55 }
  0xc7   : > { %973 = vmatpush.msrb.mxu2 %v932_v62 }
  0xc9   : > { %974 = vmatpush.msrb.mxu2 %v930_v7 }
  0xca   : > { %819 = vmatmul.f32.gmra.mxu0 %v1992_v24  ;;  %v949_v24 = vld [vmem:[#allocation9 + $0xc8] sm:$0xff] }
  0xcd   : > { %860 = vmatmul.f32.gmra.mxu1 %v1988_v19  ;;  %v951_v19 = vld [vmem:[#allocation9 + $0xd8] sm:$0xff] }
  0xce   : > { %1005 = vmatpush.msrb.mxu3 %v951_v19  ;;  %v2072_v19 = vperm.slane %v2044_v34, 1 }
  0xd0   : > { %1006 = vmatpush.msrb.mxu3 %v949_v24 }
  0xd2   : > { %822 = vmatmul.f32.gmra.mxu0 %v585_v52  ;;  %1007 = vmatpush.msrb.mxu3 %v947_v28 }
  0xd4   : > { %1008 = vmatpush.msrb.mxu3 %v945_v36 }
  0xd5   : > { %863 = vmatmul.f32.gmra.mxu1 %v2006_v48 }
  0xd6   : > { %1009 = vmatpush.msrb.mxu3 %v943_v41 }
  0xd8   : > { %1010 = vmatpush.msrb.mxu3 %v941_v45 }
  0xda   : > { %825 = vmatmul.f32.gmra.mxu0 %v591_v2  ;;  %1011 = vmatpush.msrb.mxu3 %v939_v50 }
  0xdc   : > { %1012 = vmatpush.msrb.mxu3 %v937_v54 }
  0xdd   : > { %866 = vmatmul.f32.gmra.mxu1 %v593_v0 }
  0xde   : > { %1013 = vmatpush.msrb.mxu3 %v935_v60 }
  0xe0   : > { %1014 = vmatpush.msrb.mxu3 %v933_v4 }
  0xe2   : > { %828 = vmatmul.f32.gmra.mxu0 %v597_v11  ;;  %v928_v11 = vld [vmem:[#allocation9 + $0x20] sm:$0xff] }
  0xe3   : > { %975 = vmatpush.msrb.mxu2 %v928_v11 }
  0xe5   : > { %869 = vmatmul.f32.gmra.mxu1 %v599_v8  ;;  %v931_v8 = vld [vmem:[#allocation9 + $0x38] sm:$0xff]  ;;  %976 = vmatpush.msrb.mxu2 %v926_v15 }
  0xe6   : > { %1015 = vmatpush.msrb.mxu3 %v931_v8 }
  0xe7   : > { %977 = vmatpush.msrb.mxu2 %v924_v30 }
  0xe8   : > { %1016 = vmatpush.msrb.mxu3 %v929_v12 }
  0xea   : > { %831 = vmatmul.f32.gmra.mxu0 %v603_v17  ;;  %1017 = vmatpush.msrb.mxu3 %v927_v16 }
  0xec   : > { %1018 = vmatpush.msrb.mxu3 %v925_v10 }
  0xed   : > { %872 = vmatmul.f32.gmra.mxu1 %v605_v33 }
  0xef   : > { %v647_v61 = vpop.f32.mrf.mxu0 }
  0xf0   : > { %v648_v18 = vadd.f32 %v647_v61, %v2047_v57 }
  0xf2   : > { %v688_v21 = vpop.f32.mrf.mxu1 }
  0xf3   : > { %v2050_v23 = vadd.f32 %v688_v21, %v648_v18 }
  0xf6   : > { %v729_v38 = vpop.f32.mrf.mxu2 }
  0xf7   : > { %v650_v26 = vpop.f32.mrf.mxu0 }
  0xf8   : > { %v651_v27 = vadd.f32 %v650_v26, %v2047_v57 }
  0xfa   : > { %v691_v31 = vpop.f32.mrf.mxu1 }
  0xfb   : > { %v2053_v32 = vadd.f32 %v691_v31, %v651_v27 }
  0xfe   : > { %v732_v25 = vpop.f32.mrf.mxu2 }
  0xff   : > { %v653_v39 = vpop.f32.mrf.mxu0  ;;  %v733_v50 = vadd.f32 %v732_v25, %v2053_v32 }
 0x100   : > { %v654_v40 = vadd.f32 %v653_v39, %v2047_v57  ;;  %v730_v39 = vadd.f32 %v729_v38, %v2050_v23 }
 0x102   : > { %v694_v43 = vpop.f32.mrf.mxu1 }
 0x103   : > { %v2056_v44 = vadd.f32 %v694_v43, %v654_v40 }
 0x106   : > { %v735_v34 = vpop.f32.mrf.mxu2 }
 0x107   : > { %v656_v48 = vpop.f32.mrf.mxu0  ;;  %v736_v32 = vadd.f32 %v735_v34, %v2056_v44 }
 0x108   : > { %v657_v49 = vadd.f32 %v656_v48, %v2047_v57 }
 0x109   : > { %v770_v9 = vpop.f32.mrf.mxu3 }
 0x10a   : > { %v697_v52 = vpop.f32.mrf.mxu1  ;;  %v771_v24 = vadd.f32 %v770_v9, %v2072_v19 }
 0x10b   : > { %v2059_v53 = vadd.f32 %v697_v52, %v657_v49 }
 0x10f   : > { %v659_v58 = vpop.f32.mrf.mxu0 }
 0x110   : > { %v660_v59 = vadd.f32 %v659_v58, %v2047_v57 }
 0x111   : > { %v773_v56 = vpop.f32.mrf.mxu3 }
 0x112   : > { %v700_v63 = vpop.f32.mrf.mxu1  ;;  %v774_v37 = vadd.f32 %v773_v56, %v2072_v19 }
 0x113   : > { %v2062_v0 = vadd.f32 %v700_v63, %v660_v59  ;;  %v738_v59 = vpop.f32.mrf.mxu2 }
 0x114   : > { %v739_v44 = vadd.f32 %v738_v59, %v2059_v53 }
 0x117   : > { %v662_v1 = vpop.f32.mrf.mxu0 }
 0x118   : > { %v663_v2 = vadd.f32 %v662_v1, %v2047_v57 }
 0x119   : > { %v776_v27 = vpop.f32.mrf.mxu3 }
 0x11a   : > { %v703_v3 = vpop.f32.mrf.mxu1  ;;  %v777_v48 = vadd.f32 %v776_v27, %v2072_v19 }
 0x11b   : > { %v2065_v6 = vadd.f32 %v703_v3, %v663_v2  ;;  %v741_v16 = vpop.f32.mrf.mxu2 }
 0x11f   : > { %v665_v13 = vpop.f32.mrf.mxu0 }
 0x120   : > { %v666_v33 = vadd.f32 %v665_v13, %v2047_v57 }
 0x121   : > { %v779_v42 = vpop.f32.mrf.mxu3 }
 0x122   : > { %v706_v17 = vpop.f32.mrf.mxu1  ;;  %v780_v2 = vadd.f32 %v779_v42, %v2072_v19 }
 0x123   : > { %v2068_v14 = vadd.f32 %v706_v17, %v666_v33 }
 0x127   : > { %v668_v61 = vpop.f32.mrf.mxu0 }
 0x128   : > { %v669_v18 = vadd.f32 %v668_v61, %v2047_v57 }
 0x129   : > { %v782_v62 = vpop.f32.mrf.mxu3 }
 0x12a   : > { %v709_v20 = vpop.f32.mrf.mxu1  ;;  %v783_v17 = vadd.f32 %v782_v62, %v2072_v19 }
 0x12b   : > { %v2074_v21 = vadd.f32 %v709_v20, %v669_v18 }
 0x12f   : > { %v811_v26 = vpop.f32.mrf.mxu0 }
 0x130   : > { %v812_v28 = vadd.f32 %v811_v26, %v771_v24 }
 0x131   : > { %v785_v10 = vpop.f32.mrf.mxu3 }
 0x132   : > { %v852_v29 = vpop.f32.mrf.mxu1 }
 0x133   : > { %v853_v31 = vadd.f32 %v852_v29, %v812_v28  ;;  %v786_v28 = vadd.f32 %v785_v10, %v2072_v19 }
 0x135   : > { %v876_v36 = vmul.f32 0.5, %v853_v31  ;;  %v742_v31 = vadd.f32 %v741_v16, %v2062_v0 }
 0x137   : > { %1380 = vtanh.f32 %v876_v36  ;;  %v814_v57 = vpop.f32.mrf.mxu0  ;;  %v744_v36 = vpop.f32.mrf.mxu2 }
 0x138   : > { %v815_v40 = vadd.f32 %v814_v57, %v774_v37  ;;  %1382 = vtanh.f32 %v730_v39  ;;  %v745_v0 = vadd.f32 %v744_v36, %v2065_v6 }
 0x139   : > { %v788_v39 = vpop.f32.mrf.mxu3 }
 0x13a   : > { %v855_v41 = vpop.f32.mrf.mxu1 }
 0x13b   : > { %v856_v43 = vadd.f32 %v855_v41, %v815_v40 }
 0x13d   : > { %v1381_v45 = vpop.eup %1380  ;;  %v877_v47 = vmul.f32 0.5, %v856_v43 }
 0x13e   : > { %v892_v49 = vadd.f32 1.0, %v1381_v45  ;;  %v1383_v54 = vpop.eup %1382 }
 0x13f   : > { %1384 = vtanh.f32 %v877_v47  ;;  %v817_v52 = vpop.f32.mrf.mxu0  ;;  %v789_v47 = vadd.f32 %v788_v39, %v2072_v19 }
 0x140   : > { %v900_v51 = vmul.f32 0.5, %v892_v49  ;;  %v818_v23 = vadd.f32 %v817_v52, %v777_v48  ;;  %1386 = vtanh.f32 %v733_v50  ;;  %v747_v52 = vpop.f32.mrf.mxu2 }
 0x141   : > { %v748_v6 = vadd.f32 %v747_v52, %v2068_v14 }
 0x142   : > { %v858_v55 = vpop.f32.mrf.mxu1  ;;  %v916_v58 = vmul.f32 %v1383_v54, %v900_v51 }
 0x143   : > { %v859_v60 = vadd.f32 %v858_v55, %v818_v23 }
 0x144   : > { %978 = vmatmul.f32.vlgmr.msrb.gmra.mxu2 %v916_v58  ;;  %1019 = vmatmul.f32.vlgmr.msrb.gmra.mxu3 %v916_v58  ;;  %v791_v58 = vpop.f32.mrf.mxu3 }
 0x145   : > { %v1385_v63 = vpop.eup %1384  ;;  %v878_v1 = vmul.f32 0.5, %v859_v60 }
 0x146   : > { %v893_v3 = vadd.f32 1.0, %v1385_v63  ;;  %v1387_v7 = vpop.eup %1386  ;;  %v792_v63 = vadd.f32 %v791_v58, %v2072_v19 }
 0x147   : > { %1388 = vtanh.f32 %v878_v1  ;;  %v820_v4 = vpop.f32.mrf.mxu0 }
 0x148   : > { %v901_v9 = vmul.f32 0.5, %v893_v3  ;;  %v821_v8 = vadd.f32 %v820_v4, %v780_v2  ;;  %1390 = vtanh.f32 %v736_v32 }
 0x14a   : > { %v861_v11 = vpop.f32.mrf.mxu1  ;;  %v917_v12 = vmul.f32 %v1387_v7, %v901_v9 }
 0x14b   : > { %v862_v13 = vadd.f32 %v861_v11, %v821_v8  ;;  %v750_v11 = vpop.f32.mrf.mxu2 }
 0x14c   : > { %981 = vmatmul.f32.gmra.mxu2 %v917_v12  ;;  %1022 = vmatmul.f32.gmra.mxu3 %v917_v12  ;;  %v751_v19 = vadd.f32 %v750_v11, %v2074_v21  ;;  %v956_v21 = vld [vmem:[%s2235_s30] sm:$0x3] }
 0x14d   : > { %v1389_v15 = vpop.eup %1388  ;;  %v879_v33 = vmul.f32 0.5, %v862_v13 }
 0x14e   : > { %v894_v30 = vadd.f32 1.0, %v1389_v15  ;;  %v1391_v61 = vpop.eup %1390 }
 0x14f   : > { %1392 = vtanh.f32 %v879_v33  ;;  %v823_v38 = vpop.f32.mrf.mxu0 }
 0x150   : > { %v902_v56 = vmul.f32 0.5, %v894_v30  ;;  %v824_v18 = vadd.f32 %v823_v38, %v783_v17  ;;  %1394 = vtanh.f32 %v739_v44 }
 0x152   : > { %v864_v20 = vpop.f32.mrf.mxu1  ;;  %v918_v24 = vmul.f32 %v1391_v61, %v902_v56  ;;  %v2095_v56 = vperm.slane %v956_v21, 0  ;;  %v2097_v61 = vperm.slane %v956_v21, 1  ;;  %v393_v21 = vld [vmem:[%s1835_s0 + $0x78] sm:$0xff] }
 0x153   : > { %v865_v25 = vadd.f32 %v864_v20, %v824_v18  ;;  %v379_v20 = vld [vmem:[%s1835_s0 + $0x8] sm:$0xff] }
 0x154   : > { %984 = vmatmul.f32.gmra.mxu2 %v918_v24  ;;  %1025 = vmatmul.f32.gmra.mxu3 %v918_v24 }
 0x155   : > { %v1393_v26 = vpop.eup %1392  ;;  %v880_v27 = vmul.f32 0.5, %v865_v25 }
 0x156   : > { %v895_v29 = vadd.f32 1.0, %v1393_v26  ;;  %v1395_v57 = vpop.eup %1394 }
 0x157   : > { %1396 = vtanh.f32 %v880_v27  ;;  %v826_v53 = vpop.f32.mrf.mxu0  ;;  %v1412_v27 = vld [vmem:[%s1835_s0] sm:$0xff] }
 0x158   : > { %v903_v37 = vmul.f32 0.5, %v895_v29  ;;  %v827_v34 = vadd.f32 %v826_v53, %v786_v28  ;;  %1398 = vtanh.f32 %v742_v31  ;;  %v381_v53 = vld [vmem:[%s1835_s0 + $0x18] sm:$0xff] }
 0x15a   : > { %v867_v40 = vpop.f32.mrf.mxu1  ;;  %v919_v41 = vmul.f32 %v1395_v57, %v903_v37 }
 0x15b   : > { %v868_v42 = vadd.f32 %v867_v40, %v827_v34  ;;  %v1413_v34 = vld [vmem:[%s1835_s0 + $0x10] sm:$0xff] }
 0x15c   : > { %987 = vmatmul.f32.gmra.mxu2 %v919_v41  ;;  %1028 = vmatmul.f32.gmra.mxu3 %v919_v41 }
 0x15d   : > { %v1397_v43 = vpop.eup %1396  ;;  %v881_v45 = vmul.f32 0.5, %v868_v42 }
 0x15e   : > { %v896_v48 = vadd.f32 1.0, %v1397_v43  ;;  %v1399_v51 = vpop.eup %1398 }
 0x15f   : > { %1400 = vtanh.f32 %v881_v45  ;;  %v829_v49 = vpop.f32.mrf.mxu0  ;;  %v383_v45 = vld [vmem:[%s1835_s0 + $0x28] sm:$0xff] }
 0x160   : > { %v904_v50 = vmul.f32 0.5, %v896_v48  ;;  %v830_v54 = vadd.f32 %v829_v49, %v789_v47  ;;  %1402 = vtanh.f32 %v745_v0  ;;  %v1414_v49 = vld [vmem:[%s1835_s0 + $0x20] sm:$0xff] }
 0x162   : > { %v870_v23 = vpop.f32.mrf.mxu1  ;;  %v920_v55 = vmul.f32 %v1399_v51, %v904_v50 }
 0x163   : > { %v871_v59 = vadd.f32 %v870_v23, %v830_v54  ;;  %v385_v23 = vld [vmem:[%s1835_s0 + $0x38] sm:$0xff] }
 0x164   : > { %990 = vmatmul.f32.gmra.mxu2 %v920_v55  ;;  %1031 = vmatmul.f32.gmra.mxu3 %v920_v55 }
 0x165   : > { %v1401_v60 = vpop.eup %1400  ;;  %v882_v62 = vmul.f32 0.5, %v871_v59 }
 0x166   : > { %v897_v1 = vadd.f32 1.0, %v1401_v60  ;;  %v1403_v32 = vpop.eup %1402 }
 0x167   : > { %1404 = vtanh.f32 %v882_v62  ;;  %v832_v2 = vpop.f32.mrf.mxu0 }
 0x168   : > { %v905_v3 = vmul.f32 0.5, %v897_v1  ;;  %v833_v4 = vadd.f32 %v832_v2, %v792_v63  ;;  %1406 = vtanh.f32 %v748_v6  ;;  %v387_v6 = vld [vmem:[%s1835_s0 + $0x48] sm:$0xff] }
 0x16a   : > { %v873_v9 = vpop.f32.mrf.mxu1  ;;  %v921_v7 = vmul.f32 %v1403_v32, %v905_v3 }
 0x16b   : > { %v874_v8 = vadd.f32 %v873_v9, %v833_v4 }
 0x16c   : > { %993 = vmatmul.f32.gmra.mxu2 %v921_v7  ;;  %1034 = vmatmul.f32.gmra.mxu3 %v921_v7 }
 0x16d   : > { %v1405_v12 = vpop.eup %1404  ;;  %v883_v13 = vmul.f32 0.5, %v874_v8  ;;  %v389_v8 = vld [vmem:[%s1835_s0 + $0x58] sm:$0xff] }
 0x16e   : > { %v898_v15 = vadd.f32 1.0, %v1405_v12  ;;  %v1407_v14 = vpop.eup %1406 }
 0x16f   : > { %1408 = vtanh.f32 %v883_v13 }
 0x170   : > { %v906_v16 = vmul.f32 0.5, %v898_v15  ;;  %1410 = vtanh.f32 %v751_v19 }
 0x172   : > { %v922_v33 = vmul.f32 %v1407_v14, %v906_v16  ;;  %v391_v14 = vld [vmem:[%s1835_s0 + $0x68] sm:$0xff]  ;;  %s1552_s0 = scalar_lea.hbm %s1551_s20, 128 }
 0x173   : > { %p1553_p1 = scmp.ne.s32.totalorder %s1551_s20, %s1552_s0  ;;  %p1558_p12 = scmp.lt.s32.totalorder %s1556_s28, %s1552_s0 }
 0x174   : > { %996 = vmatmul.f32.gmra.mxu2 %v922_v33  ;;  %1037 = vmatmul.f32.gmra.mxu3 %v922_v33 }
 0x175   : > { %v1409_v17 = vpop.eup %1408  ;;  %p1554_p4 = pnand %p1553_p1, %p1789_p5  ;;  %p1559_p13 = por %p1558_p12, %p1557_p11 }
 0x176   : > { %v899_v30 = vadd.f32 1.0, %v1409_v17  ;;  %v1411_v44 = vpop.eup %1410 }
 0x177   : > { %p1555_p10 = pneg %p1554_p4 }
 0x178   : > { %v907_v10 = vmul.f32 0.5, %v899_v30 }
 0x179   : > { %p1560_p0 = pnand %p1559_p13, %p1555_p10 }
 0x17a   : > { %v923_v38 = vmul.f32 %v1411_v44, %v907_v10 }
 0x17c   : > { %999 = vmatmul.f32.gmra.mxu2 %v923_v38  ;;  %1040 = vmatmul.f32.gmra.mxu3 %v923_v38 }
 0x1c7   : > { %v979_v18 = vpop.f32.mrf.mxu2  ;;  %v1020_v24 = vpop.f32.mrf.mxu3 }
 0x1c8   : > { %v980_v25 = vadd.f32 %v979_v18, %v2095_v56  ;;  %v1021_v26 = vadd.f32 %v1020_v24, %v2097_v61 }
 0x1ca   : > { %v1044_v28 = vadd.f32 %v1412_v27, %v980_v25  ;;  %v1060_v29 = vadd.f32 %v1021_v26, %v379_v20 }
 0x1cc   : > { %v1052_v31 = vmul.f32 0.70710677, %v1044_v28  ;;  %1076 = vst [vmem:[%s1857_s12 + $0x8] sm:$0xff] %v1060_v29 }
 0x1ce   : > { %1068 = vst [vmem:[%s1857_s12] sm:$0xff] %v1052_v31 }
 0x1cf   : > { %v982_v36 = vpop.f32.mrf.mxu2  ;;  %v1023_v37 = vpop.f32.mrf.mxu3 }
 0x1d0   : > { %v983_v39 = vadd.f32 %v982_v36, %v2095_v56  ;;  %v1024_v57 = vadd.f32 %v1023_v37, %v2097_v61 }
 0x1d2   : > { %v1045_v40 = vadd.f32 %v1413_v34, %v983_v39  ;;  %v1061_v41 = vadd.f32 %v1024_v57, %v381_v53 }
 0x1d4   : > { %v1053_v42 = vmul.f32 0.70710677, %v1045_v40  ;;  %1077 = vst [vmem:[%s1857_s12 + $0x18] sm:$0xff] %v1061_v41 }
 0x1d6   : > { %1069 = vst [vmem:[%s1857_s12 + $0x10] sm:$0xff] %v1053_v42 }
 0x1d7   : > { %v985_v43 = vpop.f32.mrf.mxu2  ;;  %v1026_v47 = vpop.f32.mrf.mxu3 }
 0x1d8   : > { %v986_v48 = vadd.f32 %v985_v43, %v2095_v56  ;;  %v1027_v0 = vadd.f32 %v1026_v47, %v2097_v61 }
 0x1da   : > { %v1046_v50 = vadd.f32 %v1414_v49, %v986_v48  ;;  %v1062_v51 = vadd.f32 %v1027_v0, %v383_v45 }
 0x1dc   : > { %v1054_v52 = vmul.f32 0.70710677, %v1046_v50  ;;  %1078 = vst [vmem:[%s1857_s12 + $0x28] sm:$0xff] %v1062_v51 }
 0x1de   : > { %1070 = vst [vmem:[%s1857_s12 + $0x20] sm:$0xff] %v1054_v52 }
 0x1df   : > { %v988_v54 = vpop.f32.mrf.mxu2  ;;  %v1029_v55 = vpop.f32.mrf.mxu3 }
 0x1e0   : > { %v989_v58 = vadd.f32 %v988_v54, %v2095_v56  ;;  %v1030_v59 = vadd.f32 %v1029_v55, %v2097_v61 }
 0x1e2   : > { %v1047_v60 = vadd.f32 %v989_v58, %v1920_v22  ;;  %v1063_v62 = vadd.f32 %v1030_v59, %v385_v23 }
 0x1e4   : > { %v1055_v63 = vmul.f32 0.70710677, %v1047_v60  ;;  %1079 = vst [vmem:[%s1857_s12 + $0x38] sm:$0xff] %v1063_v62 }
 0x1e6   : > { %1071 = vst [vmem:[%s1857_s12 + $0x30] sm:$0xff] %v1055_v63 }
 0x1e7   : > { %v991_v1 = vpop.f32.mrf.mxu2  ;;  %v1032_v2 = vpop.f32.mrf.mxu3 }
 0x1e8   : > { %v992_v3 = vadd.f32 %v991_v1, %v2095_v56  ;;  %v1033_v32 = vadd.f32 %v1032_v2, %v2097_v61 }
 0x1ea   : > { %v1048_v4 = vadd.f32 %v992_v3, %v1949_v46  ;;  %v1064_v9 = vadd.f32 %v1033_v32, %v387_v6 }
 0x1ec   : > { %v1056_v22 = vmul.f32 0.70710677, %v1048_v4  ;;  %1080 = vst [vmem:[%s1857_s12 + $0x48] sm:$0xff] %v1064_v9 }
 0x1ee   : > { %1072 = vst [vmem:[%s1857_s12 + $0x40] sm:$0xff] %v1056_v22 }
 0x1ef   : > { %v994_v7 = vpop.f32.mrf.mxu2  ;;  %v1035_v11 = vpop.f32.mrf.mxu3 }
 0x1f0   : > { %v995_v12 = vadd.f32 %v994_v7, %v2095_v56  ;;  %v1036_v13 = vadd.f32 %v1035_v11, %v2097_v61 }
 0x1f2   : > { %v1049_v15 = vadd.f32 %v995_v12, %v1978_v5  ;;  %v1065_v19 = vadd.f32 %v1036_v13, %v389_v8 }
 0x1f4   : > { %v1057_v16 = vmul.f32 0.70710677, %v1049_v15  ;;  %1081 = vst [vmem:[%s1857_s12 + $0x58] sm:$0xff] %v1065_v19 }
 0x1f6   : > { %1073 = vst [vmem:[%s1857_s12 + $0x50] sm:$0xff] %v1057_v16 }
 0x1f7   : > { %v997_v46 = vpop.f32.mrf.mxu2  ;;  %v1038_v33 = vpop.f32.mrf.mxu3 }
 0x1f8   : > { %v998_v17 = vadd.f32 %v997_v46, %v2095_v56  ;;  %v1039_v30 = vadd.f32 %v1038_v33, %v2097_v61 }
 0x1fa   : > { %v1050_v5 = vadd.f32 %v998_v17, %v2000_v35  ;;  %v1066_v10 = vadd.f32 %v1039_v30, %v391_v14  ;;  %v1415_v35 = vld [vmem:[#allocation2] sm:$0xff] }
 0x1fc   : > { %v1058_v44 = vmul.f32 0.70710677, %v1050_v5  ;;  %1082 = vst [vmem:[%s1857_s12 + $0x68] sm:$0xff] %v1066_v10 }
 0x1fe   : > { %1074 = vst [vmem:[%s1857_s12 + $0x60] sm:$0xff] %v1058_v44 }
 0x1ff   : > { %v1000_v38 = vpop.f32.mrf.mxu2  ;;  %v1041_v18 = vpop.f32.mrf.mxu3 }
 0x200   : > { %v1001_v20 = vadd.f32 %v1000_v38, %v2095_v56  ;;  %v1042_v24 = vadd.f32 %v1041_v18, %v2097_v61 }
 0x202   : > { %v1051_v25 = vadd.f32 %v1415_v35, %v1001_v20  ;;  %v1067_v26 = vadd.f32 %v1042_v24, %v393_v21 }
 0x204   : > { %v1059_v27 = vmul.f32 0.70710677, %v1051_v25  ;;  %1083 = vst [vmem:[%s1857_s12 + $0x78] sm:$0xff] %v1067_v26 }
 0x206   : > { %1075 = vst [vmem:[%s1857_s12 + $0x70] sm:$0xff] %v1059_v27 }
 0x207   : > { %1563 = shalt.err (!%p1560_p0)
}
 0x208   : > { %s1655_s9 = smov 256   ;;  %s1656_s12 = smov 16  }
 0x209   : > { %1281 = dma.vmem_to_hbm [thread:$0]  (%p1789_p5), %s1101_s17, 2048, %s1103_s25, %s1085_s16, %s1655_s9, %s1655_s9, %s1656_s12  }
 0x20a PF: > { %s2239_s7 = sld [smem:[#allocation20_spill]] }
 0x20b   : > { %s2240_s10 = sld [smem:[#allocation17_spill]] }
 0x210   : > { %p1306_p3 = scmp.ge.s32.totalorder %s2239_s7, 2 }
 0x211   : > { %s1117_s30 = sand.u32 1, %s2240_s10  }
 0x212   : > { %p1298_p7 = pnand %p1306_p3, %p1747_p6  ;;  %s1118_s18 = scalar_lea.sflag [#allocation5], %s1117_s30 }
 0x214   : > { %p1299_p9 = pneg %p1298_p7 }
 0x216   : > { %1613 = dma.done.wait (%p1299_p9), %s1118_s18, 2048  }
 0x217   : > { %1615 = vsyncadd (%p1299_p9), %s1118_s18, 4294965248  ;;  %s26_s28 = sadd.s32 1, %s2239_s7   ;;  %s2242_s4 = sld [smem:[#allocation18_spill]] }
 0x218   : > { %p23_p2 = scmp.ge.s32.totalorder %s26_s28, 10   ;;  %s2243_s23 = sld [smem:[#allocation25_spill]] }
 0x219   : > { %s2244_s19 = sld [smem:[#allocation22_spill]]  ;;  %s2246_s21 = smov %s1622_s22 }
 0x21a   : > { %s2245_s2 = sld [smem:[#allocation24_spill]]  ;;  %s2248_s24 = smov %s1638_s26 }
 0x21b   : > { %s2249_s25 = smov %s1642_s27 }
 0x21c   :  { %25 = sbr.rel (!%p23_p2) target bundleno = 16 (0x10), region = 114 }
 0x21d   : > { %s2247_s22 = smov %s2242_s4 }
 0x21f   : > { %s2250_s26 = smov %s2244_s19 }
 0x220   : > { %s2251_s27 = smov %s2245_s2 }
 0x221   :  { %1124 = vsyncpa [#allocation4], 1 }
 0x222   :  { %1126 = vsyncpa [#allocation4 + $0x1], 1 }
 0x223   :  { %1127 = vsyncpa [#allocation7], 1 }
 0x224   :  { %1129 = vsyncpa [#allocation7 + $0x1], 1 }
 0x225   :  { %1130 = vsyncpa [#allocation10], 1 }
 0x226   :  { %1131 = vsyncpa [#allocation5], 1 }
 0x227   :  { %1133 = vsyncpa [#allocation5 + $0x1], 1 }

</bundles_post_ra>
